<compile_context>
chip_gen: v7x
topology: tpu7x:2x2x1
jax: 0.10.0
libtpu: 0.0.40
codegen_flags: <defaults>
</compile_context>

<pallas_src>
import functools

import jax
import jax.numpy as jnp
from jax.experimental import pallas as pl
from jax.experimental.pallas import tpu as pltpu

LANE = 128


def _round_up(x, m):
    return ((x + m - 1) // m) * m


def _vmem_budget_bytes():
    """Per-generation VMEM budget (v7x: 64 MiB/TC; v5e/v6e: 128 MiB)."""
    try:
        cap = int(pltpu.get_tpu_info().vmem_capacity_bytes)
    except Exception:
        cap = 64 * 1024 * 1024                   # conservative (v7x per-TC)
    return min((cap * 3) // 4, 100 * 1024 * 1024)


def _pick_tile_hw(hw, feat_dim, budget_bytes):
    """Largest lane-multiple spatial tile that fits the VMEM budget.

    The (F, tile) matmul output dominates the per-step working set; keep a few
    live copies of it (+ double-buffered x + the (F,128) accumulator) well
    under the budget.
    """
    by_vmem = budget_bytes // (feat_dim * 4 * 4)
    max_tile = max(LANE, min(4096, (by_vmem // LANE) * LANE))
    if hw <= max_tile:
        return _round_up(hw, LANE)               # single (possibly padded) tile
    for t in range(max_tile, LANE - 1, -LANE):
        if hw % t == 0:                          # exact divisor -> no padding
            return t
    return max_tile                              # padded + masked path


def _build_fused_encoder_call(B, C, HW, HW_pad, F, E_pad, tile_hw, vmem_limit):
    assert HW_pad % tile_hw == 0 and tile_hw % LANE == 0
    n_s = HW_pad // tile_hw
    n_lane_blocks = tile_hw // LANE
    needs_mask = HW_pad != HW
    inv_hw = 1.0 / float(HW)

    def kernel(x_ref, wbb_ref, bbb_ref, wemb_ref, bemb_ref, o_ref, acc_ref):
        s = pl.program_id(1)

        @pl.when(s == 0)
        def _init():
            acc_ref[...] = jnp.zeros_like(acc_ref)

        # ---- 1x1 conv (backbone stand-in) on the MXU; bias+ReLU on the VPU.
        x = x_ref[0]                                              # (C, tile_hw)
        y = jnp.dot(wbb_ref[...], x, preferred_element_type=jnp.float32)
        y = jnp.maximum(y + bbb_ref[...], 0.0)                    # (F, tile_hw)

        if needs_mask:
            # Zero spatial-padding columns so ReLU(bias) there cannot corrupt
            # the average pool (only emitted when HW had to be padded).
            pos = s * tile_hw + jax.lax.broadcasted_iota(
                jnp.int32, (F, tile_hw), 1)
            y = jnp.where(pos < HW, y, 0.0)

        # ---- global-average-pool partial sums: fold the tile into 128-lane
        # blocks with pure VPU adds, then a single RMW of the small (F, 128)
        # accumulator.
        partial = y[:, 0:LANE]
        for j in range(1, n_lane_blocks):
            partial = partial + y[:, j * LANE:(j + 1) * LANE]
        acc_ref[...] += partial

        # ---- last spatial tile: finish the pool + Linear embedding ----------
        @pl.when(s == n_s - 1)
        def _finalize():
            # One cross-lane reduce per image (not in the hot loop).
            pooled = jnp.sum(acc_ref[...], axis=1, keepdims=True) * inv_hw  # (F, 1)
            # out[1, E] = pooled^T @ W_emb^T + b_emb as broadcast-multiply +
            # sublane reduce, so no lane<->sublane transpose of pooled.
            emb = jnp.sum(wemb_ref[...] * pooled, axis=0, keepdims=True)    # (1, E_pad)
            o_ref[0] = emb + bemb_ref[...]

    flops = 2 * B * HW * C * F + 2 * B * HW * F + 2 * B * F * E_pad
    bytes_accessed = 4 * (B * C * HW_pad + F * C + F + F * E_pad + E_pad
                          + B * E_pad)

    return pl.pallas_call(
        kernel,
        out_shape=jax.ShapeDtypeStruct((B, 1, E_pad), jnp.float32),
        grid_spec=pltpu.PrefetchScalarGridSpec(
            num_scalar_prefetch=0,
            grid=(B, n_s),                                        # (batch, spatial tiles)
            in_specs=[
                # TODO(synk): if the x DMA shows up exposed after the MXU move,
                # add pipeline_mode=pl.Buffered(3) on this spec.
                pl.BlockSpec((1, C, tile_hw), lambda b, s: (b, 0, s)),  # images (B,C,HW)
                pl.BlockSpec((F, C), lambda b, s: (0, 0)),              # conv weight
                pl.BlockSpec((F, 1), lambda b, s: (0, 0)),              # conv bias
                pl.BlockSpec((F, E_pad), lambda b, s: (0, 0)),          # embedding W^T (padded)
                pl.BlockSpec((1, E_pad), lambda b, s: (0, 0)),          # embedding bias (padded)
            ],
            out_specs=pl.BlockSpec((1, 1, E_pad), lambda b, s: (b, 0, 0)),
            scratch_shapes=[pltpu.VMEM((F, LANE), jnp.float32)],   # pooling accumulator
        ),
        compiler_params=pltpu.CompilerParams(
            # Batch axis shards across TensorCores (v7x megacore); the spatial
            # axis carries the pooling accumulator so it stays "arbitrary".
            # TODO(synk): for B == 1 on v7x, split the spatial axis across the
            # two cores with per-core partial accumulators + a combine step.
            dimension_semantics=("parallel", "arbitrary"),
            vmem_limit_bytes=int(vmem_limit),
        ),
        cost_estimate=pl.CostEstimate(
            flops=flops, transcendentals=0, bytes_accessed=bytes_accessed),
    )


def init_params(key, in_channels, feat_dim, embed_size):
    """Parameters in kernel layout (one-time layout plumbing, nothing per-call)."""
    e_pad = _round_up(embed_size, LANE)
    k1, k2, k3, k4 = jax.random.split(key, 4)
    # Backbone stand-in: pointwise conv, weight (out_ch=F, in_ch=C), bias (F, 1).
    w_bb = jax.random.normal(k1, (feat_dim, in_channels), jnp.float32) * 0.05
    b_bb = jax.random.normal(k2, (feat_dim, 1), jnp.float32) * 0.01
    # Embedding Linear, PyTorch layout (embed_size, feat_dim).
    w_emb = jax.random.normal(k3, (embed_size, feat_dim), jnp.float32) * 0.02
    b_emb = jax.random.normal(k4, (embed_size,), jnp.float32) * 0.01
    # One-time kernel layout: W^T zero-padded to a lane-dense width E_pad.
    w_emb_k = jnp.zeros((feat_dim, e_pad), jnp.float32).at[:, :embed_size].set(w_emb.T)
    b_emb_k = jnp.zeros((1, e_pad), jnp.float32).at[:, :embed_size].set(b_emb)
    return dict(w_bb=w_bb, b_bb=b_bb, w_emb=w_emb, b_emb=b_emb,
                w_emb_k=w_emb_k, b_emb_k=b_emb_k)


@functools.partial(jax.jit, static_argnames=("embed_size",))
def encoder_cnn_forward(images, params, *, embed_size):
    """images: (B, C, H, W) NCHW float32 -> features: (B, embed_size)."""
    B, C, H, W = images.shape
    HW = H * W
    F = params["w_bb"].shape[0]
    E_pad = params["w_emb_k"].shape[1]
    budget = _vmem_budget_bytes()
    tile_hw = _pick_tile_hw(HW, F, budget)
    HW_pad = _round_up(HW, tile_hw)
    # NCHW flattened: spatial (lane) axis stays dense, no transpose needed.
    x = images.reshape(B, C, HW)
    if HW_pad != HW:
        x = jnp.pad(x, ((0, 0), (0, 0), (0, HW_pad - HW)))
    call = _build_fused_encoder_call(B, C, HW, HW_pad, F, E_pad, tile_hw, budget)
    out = call(x, params["w_bb"], params["b_bb"],
               params["w_emb_k"], params["b_emb_k"])          # (B, 1, E_pad)
    return out[:, 0, :embed_size]


if __name__ == "__main__":
    B, C, H, W = 2, 3, 32, 32      # small stand-in for (B, 3, 224, 224)
    FEAT_DIM = 256                 # small stand-in for resnet.fc.in_features = 2048
    EMBED_SIZE = 32

    key = jax.random.PRNGKey(0)
    k_img, k_par = jax.random.split(key)
    images = jax.random.normal(k_img, (B, C, H, W), jnp.float32)
    params = init_params(k_par, C, FEAT_DIM, EMBED_SIZE)

    features = encoder_cnn_forward(images, params, embed_size=EMBED_SIZE)
    features = jax.block_until_ready(features)

    assert features.shape == (B, EMBED_SIZE), features.shape
    assert features.dtype == jnp.float32

    # Plain-JAX reference of the same math (HIGHEST precision = true f32).
    x2 = images.reshape(B, C, H * W)
    conv = jnp.einsum("bcs,fc->bsf", x2, params["w_bb"],
                      precision=jax.lax.Precision.HIGHEST) \
        + params["b_bb"][:, 0][None, None, :]
    feat = jnp.maximum(conv, 0.0)
    pooled = feat.mean(axis=1)                               # avgpool + flatten
    ref = jnp.einsum("bf,ef->be", pooled, params["w_emb"],
                     precision=jax.lax.Precision.HIGHEST) + params["b_emb"][None, :]
    assert jnp.allclose(features, ref, atol=2e-3, rtol=2e-3), \
        float(jnp.max(jnp.abs(features - ref)))

    print("KERNEL_OK")
</pallas_src>

<mosaic_0001>
module attributes {stable_mosaic.version = 11 : i64} {
  func.func @kernel(%arg0: i32, %arg1: i32, %arg2: memref<1x3x1024xf32, #tpu.memory_space<vmem>>, %arg3: memref<256x3xf32, #tpu.memory_space<vmem>>, %arg4: memref<256x1xf32, #tpu.memory_space<vmem>>, %arg5: memref<256x128xf32, #tpu.memory_space<vmem>>, %arg6: memref<1x128xf32, #tpu.memory_space<vmem>>, %arg7: memref<1x1x128xf32, #tpu.memory_space<vmem>>, %arg8: memref<256x128xf32, #tpu.memory_space<vmem>>) attributes {dimension_semantics = [#tpu.dimension_semantics<parallel>, #tpu.dimension_semantics<arbitrary>], iteration_bounds = array<i64: 2, 1>, scalar_prefetch = 0 : i64, scratch_operands = 1 : i64, tpu.core_type = #tpu.core_type<tc>, window_params = [{transform_indices = @transform_0, window_bounds = array<i64: 1, 3, 1024>}, {pipeline_mode = #tpu.pipeline_mode<synchronous>, transform_indices = @transform_1, window_bounds = array<i64: 256, 3>}, {pipeline_mode = #tpu.pipeline_mode<synchronous>, transform_indices = @transform_2, window_bounds = array<i64: 256, 1>}, {pipeline_mode = #tpu.pipeline_mode<synchronous>, transform_indices = @transform_3, window_bounds = array<i64: 256, 128>}, {pipeline_mode = #tpu.pipeline_mode<synchronous>, transform_indices = @transform_4, window_bounds = array<i64: 1, 128>}, {transform_indices = @transform_5, window_bounds = array<i64: 1, 1, 128>}]} {
    %c0_i32 = arith.constant 0 : i32
    %0 = arith.cmpi eq, %arg1, %c0_i32 : i32
    %1 = arith.extui %0 : i1 to i32
    %c0_i32_0 = arith.constant 0 : i32
    %2 = arith.cmpi ne, %1, %c0_i32_0 : i32
    scf.if %2 {
      %cst_14 = arith.constant 0.000000e+00 : f32
      %33 = vector.broadcast %cst_14 : f32 to vector<256x128xf32>
      %c0_15 = arith.constant 0 : index
      %c0_16 = arith.constant 0 : index
      %34 = vector.load %arg8[%c0_15, %c0_16] : memref<256x128xf32, #tpu.memory_space<vmem>>, vector<256x128xf32>
      tpu.vector_store %arg8[%c0_15, %c0_16], %33 {strides = array<i32>} : memref<256x128xf32, #tpu.memory_space<vmem>>, vector<256x128xf32>,
    } else {
    }
    %c0 = arith.constant 0 : index
    %c0_1 = arith.constant 0 : index
    %c0_2 = arith.constant 0 : index
    %3 = vector.load %arg2[%c0, %c0_1, %c0_2] : memref<1x3x1024xf32, #tpu.memory_space<vmem>>, vector<1x3x1024xf32>
    %4 = vector.shape_cast %3 : vector<1x3x1024xf32> to vector<3x1024xf32>
    %c0_3 = arith.constant 0 : index
    %c0_4 = arith.constant 0 : index
    %5 = vector.load %arg3[%c0_3, %c0_4] : memref<256x3xf32, #tpu.memory_space<vmem>>, vector<256x3xf32>
    %cst = arith.constant dense<0.000000e+00> : vector<256x1024xf32>
    %6 = tpu.matmul %5, %4, %cst {dimension_numbers = #tpu.dot_dimension_numbers<[1], [0], [0], [1], [0, 0, 1, 1], [], []>} : vector<256x3xf32>, vector<3x1024xf32>, vector<256x1024xf32> -> vector<256x1024xf32>
    %c0_5 = arith.constant 0 : index
    %c0_6 = arith.constant 0 : index
    %7 = vector.load %arg4[%c0_5, %c0_6] : memref<256x1xf32, #tpu.memory_space<vmem>>, vector<256x1xf32>
    %8 = vector.broadcast %7 : vector<256x1xf32> to vector<256x1024xf32>
    %9 = arith.addf %6, %8 : vector<256x1024xf32>
    %cst_7 = arith.constant 0.000000e+00 : f32
    %10 = vector.broadcast %cst_7 : f32 to vector<256x1024xf32>
    %11 = arith.maximumf %9, %10 : vector<256x1024xf32>
    %12 = vector.extract_strided_slice %11 {offsets = [0, 0], sizes = [256, 128], strides = [1, 1]} : vector<256x1024xf32> to vector<256x128xf32>
    %13 = vector.extract_strided_slice %11 {offsets = [0, 128], sizes = [256, 128], strides = [1, 1]} : vector<256x1024xf32> to vector<256x128xf32>
    %14 = arith.addf %12, %13 : vector<256x128xf32>
    %15 = vector.extract_strided_slice %11 {offsets = [0, 256], sizes = [256, 128], strides = [1, 1]} : vector<256x1024xf32> to vector<256x128xf32>
    %16 = arith.addf %14, %15 : vector<256x128xf32>
    %17 = vector.extract_strided_slice %11 {offsets = [0, 384], sizes = [256, 128], strides = [1, 1]} : vector<256x1024xf32> to vector<256x128xf32>
    %18 = arith.addf %16, %17 : vector<256x128xf32>
    %19 = vector.extract_strided_slice %11 {offsets = [0, 512], sizes = [256, 128], strides = [1, 1]} : vector<256x1024xf32> to vector<256x128xf32>
    %20 = arith.addf %18, %19 : vector<256x128xf32>
    %21 = vector.extract_strided_slice %11 {offsets = [0, 640], sizes = [256, 128], strides = [1, 1]} : vector<256x1024xf32> to vector<256x128xf32>
    %22 = arith.addf %20, %21 : vector<256x128xf32>
    %23 = vector.extract_strided_slice %11 {offsets = [0, 768], sizes = [256, 128], strides = [1, 1]} : vector<256x1024xf32> to vector<256x128xf32>
    %24 = arith.addf %22, %23 : vector<256x128xf32>
    %25 = vector.extract_strided_slice %11 {offsets = [0, 896], sizes = [256, 128], strides = [1, 1]} : vector<256x1024xf32> to vector<256x128xf32>
    %26 = arith.addf %24, %25 : vector<256x128xf32>
    %c0_8 = arith.constant 0 : index
    %c0_9 = arith.constant 0 : index
    %27 = vector.load %arg8[%c0_8, %c0_9] : memref<256x128xf32, #tpu.memory_space<vmem>>, vector<256x128xf32>
    %28 = arith.addf %27, %26 : vector<256x128xf32>
    %c0_10 = arith.constant 0 : index
    %c0_11 = arith.constant 0 : index
    %29 = vector.load %arg8[%c0_10, %c0_11] : memref<256x128xf32, #tpu.memory_space<vmem>>, vector<256x128xf32>
    tpu.vector_store %arg8[%c0_10, %c0_11], %28 {strides = array<i32>} : memref<256x128xf32, #tpu.memory_space<vmem>>, vector<256x128xf32>,
    %c0_i32_12 = arith.constant 0 : i32
    %30 = arith.cmpi eq, %arg1, %c0_i32_12 : i32
    %31 = arith.extui %30 : i1 to i32
    %c0_i32_13 = arith.constant 0 : i32
    %32 = arith.cmpi ne, %31, %c0_i32_13 : i32
    scf.if %32 {
      %c0_14 = arith.constant 0 : index
      %c0_15 = arith.constant 0 : index
      %33 = vector.load %arg8[%c0_14, %c0_15] : memref<256x128xf32, #tpu.memory_space<vmem>>, vector<256x128xf32>
      %cst_16 = arith.constant dense<0.000000e+00> : vector<256xf32>
      %34 = vector.multi_reduction <add>, %33, %cst_16 [1] : vector<256x128xf32> to vector<256xf32>
      %35 = vector.shape_cast %34 : vector<256xf32> to vector<256x1xf32>
      %cst_17 = arith.constant 9.765625E-4 : f32
      %36 = vector.broadcast %cst_17 : f32 to vector<256x1xf32>
      %37 = arith.mulf %35, %36 : vector<256x1xf32>
      %c0_18 = arith.constant 0 : index
      %c0_19 = arith.constant 0 : index
      %38 = vector.load %arg5[%c0_18, %c0_19] : memref<256x128xf32, #tpu.memory_space<vmem>>, vector<256x128xf32>
      %39 = vector.broadcast %37 : vector<256x1xf32> to vector<256x128xf32>
      %40 = arith.mulf %38, %39 : vector<256x128xf32>
      %cst_20 = arith.constant dense<0.000000e+00> : vector<128xf32>
      %41 = vector.multi_reduction <add>, %40, %cst_20 [0] : vector<256x128xf32> to vector<128xf32>
      %42 = vector.shape_cast %41 : vector<128xf32> to vector<1x128xf32>
      %c0_21 = arith.constant 0 : index
      %c0_22 = arith.constant 0 : index
      %43 = vector.load %arg6[%c0_21, %c0_22] : memref<1x128xf32, #tpu.memory_space<vmem>>, vector<1x128xf32>
      %44 = arith.addf %42, %43 : vector<1x128xf32>
      %c0_23 = arith.constant 0 : index
      %c0_24 = arith.constant 0 : index
      %c0_25 = arith.constant 0 : index
      %45 = vector.load %arg7[%c0_23, %c0_24, %c0_25] : memref<1x1x128xf32, #tpu.memory_space<vmem>>, vector<1x1x128xf32>
      %46 = vector.shape_cast %45 : vector<1x1x128xf32> to vector<1x128xf32>
      %47 = vector.shape_cast %44 : vector<1x128xf32> to vector<1x1x128xf32>
      tpu.vector_store %arg7[%c0_23, %c0_24, %c0_25], %47 {strides = array<i32>} : memref<1x1x128xf32, #tpu.memory_space<vmem>>, vector<1x1x128xf32>,
    } else {
    }
    return
  }
  func.func @transform_0(%arg0: i32, %arg1: i32) -> (i32, i32, i32) {
    %c0_i32 = arith.constant 0 : i32
    %c0_i32_0 = arith.constant 0 : i32
    return %arg0, %c0_i32, %arg1 : i32, i32, i32
  }
  func.func @transform_1(%arg0: i32, %arg1: i32) -> (i32, i32) {
    %c0_i32 = arith.constant 0 : i32
    %c0_i32_0 = arith.constant 0 : i32
    %c0_i32_1 = arith.constant 0 : i32
    return %c0_i32, %c0_i32_0 : i32, i32
  }
  func.func @transform_2(%arg0: i32, %arg1: i32) -> (i32, i32) {
    %c0_i32 = arith.constant 0 : i32
    %c0_i32_0 = arith.constant 0 : i32
    %c0_i32_1 = arith.constant 0 : i32
    return %c0_i32, %c0_i32_0 : i32, i32
  }
  func.func @transform_3(%arg0: i32, %arg1: i32) -> (i32, i32) {
    %c0_i32 = arith.constant 0 : i32
    %c0_i32_0 = arith.constant 0 : i32
    %c0_i32_1 = arith.constant 0 : i32
    return %c0_i32, %c0_i32_0 : i32, i32
  }
  func.func @transform_4(%arg0: i32, %arg1: i32) -> (i32, i32) {
    %c0_i32 = arith.constant 0 : i32
    %c0_i32_0 = arith.constant 0 : i32
    %c0_i32_1 = arith.constant 0 : i32
    return %c0_i32, %c0_i32_0 : i32, i32
  }
  func.func @transform_5(%arg0: i32, %arg1: i32) -> (i32, i32, i32) {
    %c0_i32 = arith.constant 0 : i32
    %c0_i32_0 = arith.constant 0 : i32
    %c0_i32_1 = arith.constant 0 : i32
    return %arg0, %c0_i32, %c0_i32_0 : i32, i32, i32
  }
}

</mosaic_0001>

<bundles_post_ra>
// kernel: encoder_cnn_forward.1
= control target key start
LH: loop header
LB: loop body
LE: loop exit
PB: predicated region body
PF: predicated region fallthrough
CT: control target
= control target key end

     0   :  { %10 = vsyncpa [#allocation4], 0  ;;  %s4155_s0 = inlined_call_operand.vmem [shape: f32[2,3,1024], index: 0, kind: input, shape index: {}]   ;;  %s4156_s1 = inlined_call_operand.vmem [shape: f32[256,3], index: 1, kind: input, shape index: {}]   ;;  %s4157_s2 = inlined_call_operand.vmem [shape: f32[256,1], index: 2, kind: input, shape index: {}]   ;;  %s4158_s3 = inlined_call_operand.vmem [shape: f32[256,128], index: 3, kind: input, shape index: {}]   ;;  %s4159_s4 = inlined_call_operand.vmem [shape: f32[1,128], index: 4, kind: input, shape index: {}]   ;;  %s4160_s5 = inlined_call_operand.hbm [shape: f32[2,1,128], index: 5, kind: output, shape index: {}]  }
   0x1   :  { %12 = vsyncpa [#allocation4 + $0x1], 0  ;;  %s2880_s18 = smov 0   ;;  %s2882_s19 = smov 0  }
   0x2   :  { %s2884_s20 = smov 0   ;;  %s2886_s21 = smov 0  }
   0x3   :  { %s2888_s22 = smov 0   ;;  %s2890_s23 = smov 0  }
   0x4 LB: > { %s2557_s24 = sadd.s32 4294967295, %s2845_s23   ;;  %s2558_s25 = sadd.s32 4294967294, %s2845_s23   ;;  %s2845_s23 = sphi %s2890_s23, %s18_s23   ;;  %s2841_s22 = sphi %s2888_s22, %s4235_s22   ;;  %s2837_s21 = sphi %s2886_s21, %s4234_s21   ;;  %s2833_s20 = sphi %s2884_s20, %s4233_s20   ;;  %s2829_s19 = sphi %s2882_s19, %s4232_s19   ;;  %s2825_s18 = sphi %s2880_s18, %s4231_s18  }
   0x5   : > { %s30_s26 = sadd.s32 1, %s2841_s22  ;;  %s149_s27 = sadd.s32 1, %s2833_s20 }
   0x6   : > { %p32_p0 = scmp.ge.s32.totalorder %s30_s26, 2  ;;  %p159_p1 = scmp.ne.s32.totalorder %s2833_s20, %s2829_s19 }
   0x7   : > { %p160_p2 = scmp.eq.s32.totalorder %s2557_s24, 1  ;;  %p165_p3 = scmp.ne.s32.totalorder %s2829_s19, %s2825_s18 }
   0x8   : > { %s4237_s26 = smov (%p32_p0, %s30_s26), 0  ;;  %p166_p5 = scmp.eq.s32.totalorder %s2558_s25, 1 }
   0x9   : > { %p2920_p4 = por %p160_p2, %p159_p1  ;;  %s146_s29 = ssub.s32 %s2841_s22, %s4237_s26 }
   0xa   : > { %p2561_p6 = scmp.ge.s32.totalorder %s2845_s23, 1  ;;  %p147_p7 = scmp.eq.s32.totalorder %s146_s29, 0 }
   0xb   : > { %p2927_p8 = por %p166_p5, %p165_p3  ;;  %p209_p9 = scmp.lt.s32.totalorder %s2845_s23, 3 }
   0xc   : > { %s2933_s6 = scalar_select %p147_p7, %s2833_s20, %s149_s27  }
   0xd   : > { %p210_p10 = pnand %p2561_p6, %p209_p9 }
   0xf   : > { %213 = sbr.rel (%p210_p10) target bundleno = 685 (0x2ad), region = 40 }
  0x16   : > { %p241_p11 = scmp.lt.s32.totalorder %s2837_s21, 1  ;;  %v2847_v0 = vmov 0.0   ;;  %v2848_v1 = vmov 0   ;;  %vm619_vm0 = vcmask 1042432   ;;  %v2945_v8 = vld [vmem:[%s4156_s1] sm:$0xff]  ;;  %vm522_vm1 = vcmask 23552  }
  0x17   : > { %700 = vmatprep.mubr.f32.mxu0 %v2847_v0  ;;  %957 = vmatprep.mubr.f32.mxu1 %v2847_v0  ;;  %v322_v11 = vld [vmem:[%s4157_s2] sm:$0xff]  ;;  %v2963_v12 = vld [vmem:[%s4156_s1 + $0x8] sm:$0xff]  ;;  %v324_v13 = vld [vmem:[%s4157_s2 + $0x10] sm:$0xff]  ;;  %s238_s9 = sand.u32 1, %s2829_s19   ;;  %s2700_s12 = sshll.u32 %s2837_s21, 4 }
  0x18   : > { %s242_s7 = scalar_select %p241_p11, %s2837_s21, 1  ;;  %2761 = vset.pattern.permute.xlu0 %v2848_v1  ;;  %2762 = vset.pattern.permute.xlu1 %v2848_v1  ;;  %v323_v14 = vld [vmem:[%s4157_s2 + $0x8] sm:$0xff]  ;;  %v2983_v15 = vld [vmem:[%s4156_s1 + $0x10] sm:$0xff]  ;;  %v325_v16 = vld [vmem:[%s4157_s2 + $0x18] sm:$0xff] }
  0x19   : > { %356 = vperm.xlu0 %2761, %v322_v11   ;;  %366 = vperm.xlu1 %2762, %v324_v13   ;;  %v326_v17 = vld [vmem:[%s4157_s2 + $0x20] sm:$0xff]  ;;  %v3001_v18 = vld [vmem:[%s4156_s1 + $0x18] sm:$0xff]  ;;  %v327_v19 = vld [vmem:[%s4157_s2 + $0x28] sm:$0xff]  ;;  %s239_s13 = scalar_lea.vmem [#allocation3], %s238_s9  ;;  %s4108_s17 = scalar_lea.hbm %s4160_s5, %s2700_s12 }
  0x1a   : > { %s2703_s8 = sshll.u32 %s242_s7, 5  ;;  %v328_v20 = vld [vmem:[%s4157_s2 + $0x30] sm:$0xff]  ;;  %v3018_v21 = vld [vmem:[%s4156_s1 + $0x20] sm:$0xff]  ;;  %v329_v22 = vld [vmem:[%s4157_s2 + $0x38] sm:$0xff]  ;;  %s2488_s14 = sshll.u32 %s239_s13, 4  ;;  %s4110_s14 = int_to_ptr.vmem [resolvable:$true] %s2488_s14 }
  0x1b   : > { %s248_s11 = scalar_lea.vmem %s4155_s0, %s2703_s8  ;;  %v330_v23 = vld [vmem:[%s4157_s2 + $0x40] sm:$0xff]  ;;  %v3035_v24 = vld [vmem:[%s4156_s1 + $0x28] sm:$0xff]  ;;  %v332_v26 = vld [vmem:[%s4157_s2 + $0x50] sm:$0xff]  ;;  %s2476_s24 = scalar_lea.sflag [#allocation4], %s238_s9 }
  0x1c   : > { %v286_v2 = vld [vmem:[%s248_s11] sm:$0x77]  ;;  %v287_v3 = vld [vmem:[%s248_s11 + $0x8] sm:$0x77]  ;;  %v288_v4 = vld [vmem:[%s248_s11 + $0x10] sm:$0x77] }
  0x1d   : > { %v518_v5 = vcombine.high %v286_v2, %v286_v2  ;;  %v519_v6 = vcombine.high %v287_v3, %v287_v3  ;;  %v289_v7 = vld [vmem:[%s248_s11 + $0x18] sm:$0x77]  ;;  %v520_v9 = vcombine.high %v288_v4, %v288_v4  ;;  %361 = vperm.xlu0 %2761, %v323_v14   ;;  %371 = vperm.xlu1 %2762, %v325_v16   ;;  %v331_v25 = vld [vmem:[%s4157_s2 + $0x48] sm:$0xff]  ;;  %v3052_v27 = vld [vmem:[%s4156_s1 + $0x30] sm:$0xff]  ;;  %s2767_s25 = scalar_lea.vmem %s4110_s14, 16  ;;  %s2849_s21 = smov [#allocation3]  }
  0x1e   : > { %v521_v10 = vcombine.high %v289_v7, %v289_v7  ;;  %v333_v28 = vld [vmem:[%s4157_s2 + $0x58] sm:$0xff]  ;;  %v334_v29 = vld [vmem:[%s4157_s2 + $0x60] sm:$0xff]  ;;  %v335_v31 = vld [vmem:[%s4157_s2 + $0x68] sm:$0xff]  ;;  %p2768_p12 = scmp.ne.s32.totalorder %s4110_s14, %s2767_s25  ;;  %s2771_s27 = sshll.u32 %s2849_s21, 4  ;;  %s2772_s27 = int_to_ptr.vmem [resolvable:$false] %s2771_s27 }
  0x1f   : > { %2564 = vmatprep.subr.msk.mxu0 %vm619_vm0, %v518_v5  ;;  %2598 = vmatprep.subr.msk.mxu1 %vm619_vm0, %v519_v6  ;;  %v3069_v30 = vld [vmem:[%s4156_s1 + $0x38] sm:$0xff]  ;;  %v336_v32 = vld [vmem:[%s4157_s2 + $0x70] sm:$0xff]  ;;  %v3086_v33 = vld [vmem:[%s4156_s1 + $0x40] sm:$0xff]  ;;  %s2773_s29 = scalar_lea.vmem %s2772_s27, 32  ;;  %p2774_p1 = scmp.lt.s32.totalorder %s4110_s14, %s2772_s27 }
  0x20   : > { %2565 = vmatpush1.msk.msra.mxu0 %vm619_vm0, %v286_v2  ;;  %2599 = vmatpush1.msk.msra.mxu1 %vm619_vm0, %v287_v3  ;;  %v337_v34 = vld [vmem:[%s4157_s2 + $0x78] sm:$0xff]  ;;  %v338_v35 = vld [vmem:[%s4157_s2 + $0x80] sm:$0xff]  ;;  %v3103_v36 = vld [vmem:[%s4156_s1 + $0x48] sm:$0xff]  ;;  %p2769_p13 = pnand %p2768_p12, %p2920_p4  ;;  %p2775_p2 = scmp.lt.s32.totalorder %s2773_s29, %s2767_s25 }
  0x21   : > { %2566 = vmatmul.mubr.msk.f32.vlgmr.msra.gmra.mrb[0].mxu0 %vm522_vm1, %v2945_v8  ;;  %2600 = vmatmul.mubr.msk.f32.vlgmr.msra.gmra.mrb[0].mxu1 %vm522_vm1, %v2945_v8  ;;  %v339_v37 = vld [vmem:[%s4157_s2 + $0x88] sm:$0xff]  ;;  %v340_v38 = vld [vmem:[%s4157_s2 + $0x90] sm:$0xff]  ;;  %v341_v40 = vld [vmem:[%s4157_s2 + $0x98] sm:$0xff] }
  0x22   : > { %2632 = vmatprep.subr.msk.mxu0 %vm619_vm0, %v520_v9  ;;  %706 = vmatprep.mubr.f32.mxu0 %v2847_v0  ;;  %v3120_v39 = vld [vmem:[%s4156_s1 + $0x50] sm:$0xff]  ;;  %v342_v41 = vld [vmem:[%s4157_s2 + $0xa0] sm:$0xff]  ;;  %v3137_v42 = vld [vmem:[%s4156_s1 + $0x58] sm:$0xff]  ;;  %p2770_p0 = pneg %p2769_p13  ;;  %p2776_p3 = por %p2775_p2, %p2774_p1 }
  0x23   : > { %2633 = vmatpush1.msk.msra.mxu0 %vm619_vm0, %v288_v4  ;;  %963 = vmatprep.mubr.f32.mxu1 %v2847_v0  ;;  %v343_v43 = vld [vmem:[%s4157_s2 + $0xa8] sm:$0xff]  ;;  %v344_v44 = vld [vmem:[%s4157_s2 + $0xb0] sm:$0xff]  ;;  %v3154_v45 = vld [vmem:[%s4156_s1 + $0x60] sm:$0xff] }
  0x24   : > { %2666 = vmatprep.subr.msk.mxu1 %vm619_vm0, %v521_v10  ;;  %376 = vperm.xlu0 %2761, %v326_v17   ;;  %v345_v46 = vld [vmem:[%s4157_s2 + $0xb8] sm:$0xff]  ;;  %v3168_v47 = vld [vmem:[%s4156_s1 + $0x68] sm:$0xff]  ;;  %v346_v48 = vld [vmem:[%s4157_s2 + $0xc0] sm:$0xff]  ;;  %p2777_p5 = pnand %p2776_p3, %p2770_p0 }
  0x25   : > { %2567 = vmatmul.mubr.msk.f32.gmra.mrb[2].mxu0 %vm522_vm1, %v2963_v12  ;;  %2601 = vmatmul.mubr.msk.f32.gmra.mrb[2].mxu1 %vm522_vm1, %v2963_v12  ;;  %v3182_v49 = vld [vmem:[%s4156_s1 + $0x70] sm:$0xff]  ;;  %v347_v50 = vld [vmem:[%s4157_s2 + $0xc8] sm:$0xff]  ;;  %v3196_v51 = vld [vmem:[%s4156_s1 + $0x78] sm:$0xff] }
  0x26   : > { %2667 = vmatpush1.msk.msra.mxu1 %vm619_vm0, %v289_v7  ;;  %712 = vmatprep.mubr.f32.mxu0 %v2847_v0  ;;  %v348_v52 = vld [vmem:[%s4157_s2 + $0xd0] sm:$0xff]  ;;  %v3210_v53 = vld [vmem:[%s4156_s1 + $0x80] sm:$0xff]  ;;  %v349_v54 = vld [vmem:[%s4157_s2 + $0xd8] sm:$0xff] }
  0x27   : > { %969 = vmatprep.mubr.f32.mxu1 %v2847_v0  ;;  %381 = vperm.xlu1 %2762, %v327_v19   ;;  %v3224_v55 = vld [vmem:[%s4156_s1 + $0x88] sm:$0xff]  ;;  %v350_v56 = vld [vmem:[%s4157_s2 + $0xe0] sm:$0xff]  ;;  %v3238_v57 = vld [vmem:[%s4156_s1 + $0x90] sm:$0xff] }
  0x28   : > { %386 = vperm.xlu0 %2761, %v328_v20   ;;  %v351_v58 = vld [vmem:[%s4157_s2 + $0xe8] sm:$0xff]  ;;  %v3252_v59 = vld [vmem:[%s4156_s1 + $0x98] sm:$0xff]  ;;  %v352_v60 = vld [vmem:[%s4157_s2 + $0xf0] sm:$0xff] }
  0x29   : > { %2568 = vmatmul.mubr.msk.f32.gmra.mrb[4].mxu0 %vm522_vm1, %v2983_v15  ;;  %2602 = vmatmul.mubr.msk.f32.gmra.mrb[4].mxu1 %vm522_vm1, %v2983_v15  ;;  %v3266_v61 = vld [vmem:[%s4156_s1 + $0xa0] sm:$0xff]  ;;  %v353_v62 = vld [vmem:[%s4157_s2 + $0xf8] sm:$0xff]  ;;  %v3280_v63 = vld [vmem:[%s4156_s1 + $0xa8] sm:$0xff] }
  0x2a   : > { %718 = vmatprep.mubr.f32.mxu0 %v2847_v0  ;;  %975 = vmatprep.mubr.f32.mxu1 %v2847_v0  ;;  %v3291_v1 = vld [vmem:[%s4156_s1 + $0xb0] sm:$0xff]  ;;  %v3302_v2 = vld [vmem:[%s4156_s1 + $0xb8] sm:$0xff]  ;;  %v3313_v3 = vld [vmem:[%s4156_s1 + $0xc0] sm:$0xff] }
  0x2b   : > { %391 = vperm.xlu1 %2762, %v329_v22   ;;  %v3324_v4 = vld [vmem:[%s4156_s1 + $0xc8] sm:$0xff]  ;;  %v3335_v5 = vld [vmem:[%s4156_s1 + $0xd0] sm:$0xff]  ;;  %v3346_v6 = vld [vmem:[%s4156_s1 + $0xd8] sm:$0xff] }
  0x2c   : > { %396 = vperm.xlu0 %2761, %v330_v23   ;;  %v3357_v7 = vld [vmem:[%s4156_s1 + $0xe0] sm:$0xff]  ;;  %v3368_v9 = vld [vmem:[%s4156_s1 + $0xe8] sm:$0xff]  ;;  %v3379_v10 = vld [vmem:[%s4156_s1 + $0xf0] sm:$0xff] }
  0x2d   : > { %2569 = vmatmul.mubr.msk.f32.gmra.mrb[6].mxu0 %vm522_vm1, %v3001_v18  ;;  %2603 = vmatmul.mubr.msk.f32.gmra.mrb[6].mxu1 %vm522_vm1, %v3001_v18  ;;  %v3390_v11 = vld [vmem:[%s4156_s1 + $0xf8] sm:$0xff] }
  0x2e   : > { %724 = vmatprep.mubr.f32.mxu0 %v2847_v0  ;;  %981 = vmatprep.mubr.f32.mxu1 %v2847_v0 }
  0x2f   : > { %401 = vperm.xlu1 %2762, %v331_v25  }
  0x30   : > { %406 = vperm.xlu0 %2761, %v332_v26  }
  0x31   : > { %2570 = vmatmul.mubr.msk.f32.gmra.mrb[8].mxu0 %vm522_vm1, %v3018_v21  ;;  %2604 = vmatmul.mubr.msk.f32.gmra.mrb[8].mxu1 %vm522_vm1, %v3018_v21 }
  0x32   : > { %730 = vmatprep.mubr.f32.mxu0 %v2847_v0  ;;  %987 = vmatprep.mubr.f32.mxu1 %v2847_v0 }
  0x33   : > { %411 = vperm.xlu1 %2762, %v333_v28  }
  0x34   : > { %416 = vperm.xlu0 %2761, %v334_v29  }
  0x35   : > { %2571 = vmatmul.mubr.msk.f32.gmra.mrb[10].mxu0 %vm522_vm1, %v3035_v24  ;;  %2605 = vmatmul.mubr.msk.f32.gmra.mrb[10].mxu1 %vm522_vm1, %v3035_v24 }
  0x36   : > { %736 = vmatprep.mubr.f32.mxu0 %v2847_v0  ;;  %993 = vmatprep.mubr.f32.mxu1 %v2847_v0 }
  0x37   : > { %421 = vperm.xlu1 %2762, %v335_v31  }
  0x38   : > { %426 = vperm.xlu0 %2761, %v336_v32  }
  0x39   : > { %2572 = vmatmul.mubr.msk.f32.gmra.mrb[12].mxu0 %vm522_vm1, %v3052_v27  ;;  %2606 = vmatmul.mubr.msk.f32.gmra.mrb[12].mxu1 %vm522_vm1, %v3052_v27 }
  0x3a   : > { %742 = vmatprep.mubr.f32.mxu0 %v2847_v0  ;;  %999 = vmatprep.mubr.f32.mxu1 %v2847_v0 }
  0x3b   : > { %431 = vperm.xlu1 %2762, %v337_v34  }
  0x3c   : > { %436 = vperm.xlu0 %2761, %v338_v35  }
  0x3d   : > { %2573 = vmatmul.mubr.msk.f32.gmra.mrb[14].mxu0 %vm522_vm1, %v3069_v30  ;;  %2607 = vmatmul.mubr.msk.f32.gmra.mrb[14].mxu1 %vm522_vm1, %v3069_v30 }
  0x3e   : > { %748 = vmatprep.mubr.f32.mxu0 %v2847_v0  ;;  %1005 = vmatprep.mubr.f32.mxu1 %v2847_v0 }
  0x3f   : > { %441 = vperm.xlu1 %2762, %v339_v37  }
  0x40   : > { %446 = vperm.xlu0 %2761, %v340_v38  }
  0x41   : > { %2574 = vmatmul.mubr.msk.f32.gmra.mrb[16].mxu0 %vm522_vm1, %v3086_v33  ;;  %2608 = vmatmul.mubr.msk.f32.gmra.mrb[16].mxu1 %vm522_vm1, %v3086_v33 }
  0x42   : > { %754 = vmatprep.mubr.f32.mxu0 %v2847_v0  ;;  %1011 = vmatprep.mubr.f32.mxu1 %v2847_v0 }
  0x43   : > { %451 = vperm.xlu1 %2762, %v341_v40  }
  0x44   : > { %456 = vperm.xlu0 %2761, %v342_v41  }
  0x45   : > { %2575 = vmatmul.mubr.msk.f32.gmra.mrb[18].mxu0 %vm522_vm1, %v3103_v36  ;;  %2609 = vmatmul.mubr.msk.f32.gmra.mrb[18].mxu1 %vm522_vm1, %v3103_v36 }
  0x46   : > { %760 = vmatprep.mubr.f32.mxu0 %v2847_v0  ;;  %1017 = vmatprep.mubr.f32.mxu1 %v2847_v0 }
  0x47   : > { %461 = vperm.xlu1 %2762, %v343_v43  }
  0x48   : > { %466 = vperm.xlu0 %2761, %v344_v44  }
  0x49   : > { %2576 = vmatmul.mubr.msk.f32.gmra.mrb[20].mxu0 %vm522_vm1, %v3120_v39  ;;  %2610 = vmatmul.mubr.msk.f32.gmra.mrb[20].mxu1 %vm522_vm1, %v3120_v39 }
  0x4a   : > { %766 = vmatprep.mubr.f32.mxu0 %v2847_v0  ;;  %1023 = vmatprep.mubr.f32.mxu1 %v2847_v0 }
  0x4b   : > { %471 = vperm.xlu1 %2762, %v345_v46  }
  0x4c   : > { %476 = vperm.xlu0 %2761, %v346_v48  }
  0x4d   : > { %2577 = vmatmul.mubr.msk.f32.gmra.mrb[22].mxu0 %vm522_vm1, %v3137_v42  ;;  %2611 = vmatmul.mubr.msk.f32.gmra.mrb[22].mxu1 %vm522_vm1, %v3137_v42 }
  0x4e   : > { %772 = vmatprep.mubr.f32.mxu0 %v2847_v0  ;;  %1029 = vmatprep.mubr.f32.mxu1 %v2847_v0 }
  0x4f   : > { %481 = vperm.xlu1 %2762, %v347_v50  }
  0x50   : > { %486 = vperm.xlu0 %2761, %v348_v52  }
  0x51   : > { %2578 = vmatmul.mubr.msk.f32.gmra.mrb[24].mxu0 %vm522_vm1, %v3154_v45  ;;  %2612 = vmatmul.mubr.msk.f32.gmra.mrb[24].mxu1 %vm522_vm1, %v3154_v45 }
  0x52   : > { %778 = vmatprep.mubr.f32.mxu0 %v2847_v0  ;;  %1035 = vmatprep.mubr.f32.mxu1 %v2847_v0 }
  0x53   : > { %491 = vperm.xlu1 %2762, %v349_v54  }
  0x54   : > { %496 = vperm.xlu0 %2761, %v350_v56  }
  0x55   : > { %2579 = vmatmul.mubr.msk.f32.gmra.mrb[26].mxu0 %vm522_vm1, %v3168_v47  ;;  %2613 = vmatmul.mubr.msk.f32.gmra.mrb[26].mxu1 %vm522_vm1, %v3168_v47 }
  0x56   : > { %784 = vmatprep.mubr.f32.mxu0 %v2847_v0  ;;  %1041 = vmatprep.mubr.f32.mxu1 %v2847_v0 }
  0x57   : > { %501 = vperm.xlu1 %2762, %v351_v58  }
  0x58   : > { %506 = vperm.xlu0 %2761, %v352_v60  }
  0x59   : > { %2580 = vmatmul.mubr.msk.f32.gmra.mrb[28].mxu0 %vm522_vm1, %v3182_v49  ;;  %2614 = vmatmul.mubr.msk.f32.gmra.mrb[28].mxu1 %vm522_vm1, %v3182_v49 }
  0x5a   : > { %790 = vmatprep.mubr.f32.mxu0 %v2847_v0  ;;  %1047 = vmatprep.mubr.f32.mxu1 %v2847_v0 }
  0x5b   : > { %511 = vperm.xlu1 %2762, %v353_v62  }
  0x5d   : > { %2581 = vmatmul.mubr.msk.f32.gmra.mrb[30].mxu0 %vm522_vm1, %v3196_v51  ;;  %2615 = vmatmul.mubr.msk.f32.gmra.mrb[30].mxu1 %vm522_vm1, %v3196_v51 }
  0x5e   : > { %796 = vmatprep.mubr.f32.mxu0 %v2847_v0  ;;  %1053 = vmatprep.mubr.f32.mxu1 %v2847_v0 }
  0x61   : > { %2582 = vmatmul.mubr.msk.f32.gmra.mrb[32].mxu0 %vm522_vm1, %v3210_v53  ;;  %2616 = vmatmul.mubr.msk.f32.gmra.mrb[32].mxu1 %vm522_vm1, %v3210_v53 }
  0x62   : > { %802 = vmatprep.mubr.f32.mxu0 %v2847_v0  ;;  %1059 = vmatprep.mubr.f32.mxu1 %v2847_v0 }
  0x65   : > { %2583 = vmatmul.mubr.msk.f32.gmra.mrb[34].mxu0 %vm522_vm1, %v3224_v55  ;;  %2617 = vmatmul.mubr.msk.f32.gmra.mrb[34].mxu1 %vm522_vm1, %v3224_v55 }
  0x66   : > { %808 = vmatprep.mubr.f32.mxu0 %v2847_v0  ;;  %1065 = vmatprep.mubr.f32.mxu1 %v2847_v0 }
  0x69   : > { %2584 = vmatmul.mubr.msk.f32.gmra.mrb[36].mxu0 %vm522_vm1, %v3238_v57  ;;  %2618 = vmatmul.mubr.msk.f32.gmra.mrb[36].mxu1 %vm522_vm1, %v3238_v57 }
  0x6a   : > { %814 = vmatprep.mubr.f32.mxu0 %v2847_v0  ;;  %1071 = vmatprep.mubr.f32.mxu1 %v2847_v0 }
  0x6d   : > { %2585 = vmatmul.mubr.msk.f32.gmra.mrb[38].mxu0 %vm522_vm1, %v3252_v59  ;;  %2619 = vmatmul.mubr.msk.f32.gmra.mrb[38].mxu1 %vm522_vm1, %v3252_v59 }
  0x6e   : > { %820 = vmatprep.mubr.f32.mxu0 %v2847_v0  ;;  %1077 = vmatprep.mubr.f32.mxu1 %v2847_v0 }
  0x71   : > { %2586 = vmatmul.mubr.msk.f32.gmra.mrb[40].mxu0 %vm522_vm1, %v3266_v61  ;;  %2620 = vmatmul.mubr.msk.f32.gmra.mrb[40].mxu1 %vm522_vm1, %v3266_v61 }
  0x72   : > { %826 = vmatprep.mubr.f32.mxu0 %v2847_v0  ;;  %1083 = vmatprep.mubr.f32.mxu1 %v2847_v0 }
  0x75   : > { %2587 = vmatmul.mubr.msk.f32.gmra.mrb[42].mxu0 %vm522_vm1, %v3280_v63  ;;  %2621 = vmatmul.mubr.msk.f32.gmra.mrb[42].mxu1 %vm522_vm1, %v3280_v63 }
  0x76   : > { %832 = vmatprep.mubr.f32.mxu0 %v2847_v0  ;;  %1089 = vmatprep.mubr.f32.mxu1 %v2847_v0 }
  0x79   : > { %2588 = vmatmul.mubr.msk.f32.gmra.mrb[44].mxu0 %vm522_vm1, %v3291_v1  ;;  %2622 = vmatmul.mubr.msk.f32.gmra.mrb[44].mxu1 %vm522_vm1, %v3291_v1 }
  0x7a   : > { %838 = vmatprep.mubr.f32.mxu0 %v2847_v0  ;;  %1095 = vmatprep.mubr.f32.mxu1 %v2847_v0 }
  0x7d   : > { %2589 = vmatmul.mubr.msk.f32.gmra.mrb[46].mxu0 %vm522_vm1, %v3302_v2  ;;  %2623 = vmatmul.mubr.msk.f32.gmra.mrb[46].mxu1 %vm522_vm1, %v3302_v2 }
  0x7e   : > { %844 = vmatprep.mubr.f32.mxu0 %v2847_v0  ;;  %1101 = vmatprep.mubr.f32.mxu1 %v2847_v0 }
  0x81   : > { %2590 = vmatmul.mubr.msk.f32.gmra.mrb[48].mxu0 %vm522_vm1, %v3313_v3  ;;  %2624 = vmatmul.mubr.msk.f32.gmra.mrb[48].mxu1 %vm522_vm1, %v3313_v3 }
  0x82   : > { %850 = vmatprep.mubr.f32.mxu0 %v2847_v0  ;;  %1107 = vmatprep.mubr.f32.mxu1 %v2847_v0 }
  0x85   : > { %2591 = vmatmul.mubr.msk.f32.gmra.mrb[50].mxu0 %vm522_vm1, %v3324_v4  ;;  %2625 = vmatmul.mubr.msk.f32.gmra.mrb[50].mxu1 %vm522_vm1, %v3324_v4 }
  0x86   : > { %856 = vmatprep.mubr.f32.mxu0 %v2847_v0  ;;  %1113 = vmatprep.mubr.f32.mxu1 %v2847_v0 }
  0x89   : > { %2592 = vmatmul.mubr.msk.f32.gmra.mrb[52].mxu0 %vm522_vm1, %v3335_v5  ;;  %2626 = vmatmul.mubr.msk.f32.gmra.mrb[52].mxu1 %vm522_vm1, %v3335_v5 }
  0x8a   : > { %862 = vmatprep.mubr.f32.mxu0 %v2847_v0  ;;  %1119 = vmatprep.mubr.f32.mxu1 %v2847_v0 }
  0x8d   : > { %2593 = vmatmul.mubr.msk.f32.gmra.mrb[54].mxu0 %vm522_vm1, %v3346_v6  ;;  %2627 = vmatmul.mubr.msk.f32.gmra.mrb[54].mxu1 %vm522_vm1, %v3346_v6 }
  0x8e   : > { %868 = vmatprep.mubr.f32.mxu0 %v2847_v0  ;;  %1125 = vmatprep.mubr.f32.mxu1 %v2847_v0 }
  0x91   : > { %2594 = vmatmul.mubr.msk.f32.gmra.mrb[56].mxu0 %vm522_vm1, %v3357_v7  ;;  %2628 = vmatmul.mubr.msk.f32.gmra.mrb[56].mxu1 %vm522_vm1, %v3357_v7 }
  0x92   : > { %874 = vmatprep.mubr.f32.mxu0 %v2847_v0  ;;  %1131 = vmatprep.mubr.f32.mxu1 %v2847_v0 }
  0x95   : > { %2595 = vmatmul.mubr.msk.f32.gmra.mrb[58].mxu0 %vm522_vm1, %v3368_v9  ;;  %2629 = vmatmul.mubr.msk.f32.gmra.mrb[58].mxu1 %vm522_vm1, %v3368_v9 }
  0x96   : > { %880 = vmatprep.mubr.f32.mxu0 %v2847_v0  ;;  %1137 = vmatprep.mubr.f32.mxu1 %v2847_v0 }
  0x98   : > { %v3538_v22 = vpop.permute.xlu1 %366 }
  0x99   : > { %2596 = vmatmul.mubr.msk.f32.gmra.mrb[60].mxu0 %vm522_vm1, %v3379_v10  ;;  %2630 = vmatmul.mubr.msk.f32.gmra.mrb[60].mxu1 %vm522_vm1, %v3379_v10 }
  0x9a   : > { %886 = vmatprep.mubr.f32.mxu0 %v2847_v0  ;;  %1143 = vmatprep.mubr.f32.mxu1 %v2847_v0 }
  0x9d   : > { %2597 = vmatmul.mubr.msk.f32.gmra.mrb[62].mxu0 %vm522_vm1, %v3390_v11  ;;  %2631 = vmatmul.mubr.msk.f32.gmra.mrb[62].mxu1 %vm522_vm1, %v3390_v11 }
  0x9e   : > { %1214 = vmatprep.mubr.f32.mxu0 %v2847_v0  ;;  %1471 = vmatprep.mubr.f32.mxu1 %v2847_v0 }
  0xa1   : > { %2634 = vmatmul.mubr.msk.f32.vlgmr.msra.gmra.mrb[64].mxu0 %vm522_vm1, %v2945_v8  ;;  %2668 = vmatmul.mubr.msk.f32.vlgmr.msra.gmra.mrb[64].mxu1 %vm522_vm1, %v2945_v8  ;;  %v3518_v8 = vpop.permute.xlu0 %356 }
  0xa2   : > { %1220 = vmatprep.mubr.f32.mxu0 %v2847_v0  ;;  %1477 = vmatprep.mubr.f32.mxu1 %v2847_v0 }
  0xa5   : > { %2635 = vmatmul.mubr.msk.f32.gmra.mrb[66].mxu0 %vm522_vm1, %v2963_v12  ;;  %2669 = vmatmul.mubr.msk.f32.gmra.mrb[66].mxu1 %vm522_vm1, %v2963_v12  ;;  %v3535_v19 = vpop.permute.xlu0 %361 }
  0xa6   : > { %1226 = vmatprep.mubr.f32.mxu0 %v2847_v0  ;;  %1483 = vmatprep.mubr.f32.mxu1 %v2847_v0 }
  0xa9   : > { %2636 = vmatmul.mubr.msk.f32.gmra.mrb[68].mxu0 %vm522_vm1, %v2983_v15  ;;  %2670 = vmatmul.mubr.msk.f32.gmra.mrb[68].mxu1 %vm522_vm1, %v2983_v15 }
  0xaa   : > { %1232 = vmatprep.mubr.f32.mxu0 %v2847_v0  ;;  %1489 = vmatprep.mubr.f32.mxu1 %v2847_v0 }
  0xad   : > { %2637 = vmatmul.mubr.msk.f32.gmra.mrb[70].mxu0 %vm522_vm1, %v3001_v18  ;;  %2671 = vmatmul.mubr.msk.f32.gmra.mrb[70].mxu1 %vm522_vm1, %v3001_v18 }
  0xae   : > { %1238 = vmatprep.mubr.f32.mxu0 %v2847_v0  ;;  %1495 = vmatprep.mubr.f32.mxu1 %v2847_v0 }
  0xb1   : > { %2638 = vmatmul.mubr.msk.f32.gmra.mrb[72].mxu0 %vm522_vm1, %v3018_v21  ;;  %2672 = vmatmul.mubr.msk.f32.gmra.mrb[72].mxu1 %vm522_vm1, %v3018_v21 }
  0xb2   : > { %1244 = vmatprep.mubr.f32.mxu0 %v2847_v0  ;;  %1501 = vmatprep.mubr.f32.mxu1 %v2847_v0 }
  0xb5   : > { %2639 = vmatmul.mubr.msk.f32.gmra.mrb[74].mxu0 %vm522_vm1, %v3035_v24  ;;  %2673 = vmatmul.mubr.msk.f32.gmra.mrb[74].mxu1 %vm522_vm1, %v3035_v24 }
  0xb6   : > { %1250 = vmatprep.mubr.f32.mxu0 %v2847_v0  ;;  %1507 = vmatprep.mubr.f32.mxu1 %v2847_v0 }
  0xb9   : > { %2640 = vmatmul.mubr.msk.f32.gmra.mrb[76].mxu0 %vm522_vm1, %v3052_v27  ;;  %2674 = vmatmul.mubr.msk.f32.gmra.mrb[76].mxu1 %vm522_vm1, %v3052_v27 }
  0xba   : > { %1256 = vmatprep.mubr.f32.mxu0 %v2847_v0  ;;  %1513 = vmatprep.mubr.f32.mxu1 %v2847_v0 }
  0xbd   : > { %2641 = vmatmul.mubr.msk.f32.gmra.mrb[78].mxu0 %vm522_vm1, %v3069_v30  ;;  %2675 = vmatmul.mubr.msk.f32.gmra.mrb[78].mxu1 %vm522_vm1, %v3069_v30 }
  0xbe   : > { %1262 = vmatprep.mubr.f32.mxu0 %v2847_v0  ;;  %1519 = vmatprep.mubr.f32.mxu1 %v2847_v0 }
  0xc1   : > { %2642 = vmatmul.mubr.msk.f32.gmra.mrb[80].mxu0 %vm522_vm1, %v3086_v33  ;;  %2676 = vmatmul.mubr.msk.f32.gmra.mrb[80].mxu1 %vm522_vm1, %v3086_v33 }
  0xc2   : > { %1268 = vmatprep.mubr.f32.mxu0 %v2847_v0  ;;  %1525 = vmatprep.mubr.f32.mxu1 %v2847_v0 }
  0xc5   : > { %2643 = vmatmul.mubr.msk.f32.gmra.mrb[82].mxu0 %vm522_vm1, %v3103_v36  ;;  %2677 = vmatmul.mubr.msk.f32.gmra.mrb[82].mxu1 %vm522_vm1, %v3103_v36 }
  0xc6   : > { %1274 = vmatprep.mubr.f32.mxu0 %v2847_v0  ;;  %1531 = vmatprep.mubr.f32.mxu1 %v2847_v0 }
  0xc9   : > { %2644 = vmatmul.mubr.msk.f32.gmra.mrb[84].mxu0 %vm522_vm1, %v3120_v39  ;;  %2678 = vmatmul.mubr.msk.f32.gmra.mrb[84].mxu1 %vm522_vm1, %v3120_v39 }
  0xca   : > { %1280 = vmatprep.mubr.f32.mxu0 %v2847_v0  ;;  %1537 = vmatprep.mubr.f32.mxu1 %v2847_v0 }
  0xcd   : > { %2645 = vmatmul.mubr.msk.f32.gmra.mrb[86].mxu0 %vm522_vm1, %v3137_v42  ;;  %2679 = vmatmul.mubr.msk.f32.gmra.mrb[86].mxu1 %vm522_vm1, %v3137_v42 }
  0xce   : > { %1286 = vmatprep.mubr.f32.mxu0 %v2847_v0  ;;  %1543 = vmatprep.mubr.f32.mxu1 %v2847_v0 }
  0xd1   : > { %2646 = vmatmul.mubr.msk.f32.gmra.mrb[88].mxu0 %vm522_vm1, %v3154_v45  ;;  %2680 = vmatmul.mubr.msk.f32.gmra.mrb[88].mxu1 %vm522_vm1, %v3154_v45 }
  0xd2   : > { %1292 = vmatprep.mubr.f32.mxu0 %v2847_v0  ;;  %1549 = vmatprep.mubr.f32.mxu1 %v2847_v0 }
  0xd5   : > { %2647 = vmatmul.mubr.msk.f32.gmra.mrb[90].mxu0 %vm522_vm1, %v3168_v47  ;;  %2681 = vmatmul.mubr.msk.f32.gmra.mrb[90].mxu1 %vm522_vm1, %v3168_v47 }
  0xd6   : > { %1298 = vmatprep.mubr.f32.mxu0 %v2847_v0  ;;  %1555 = vmatprep.mubr.f32.mxu1 %v2847_v0 }
  0xd9   : > { %2648 = vmatmul.mubr.msk.f32.gmra.mrb[92].mxu0 %vm522_vm1, %v3182_v49  ;;  %2682 = vmatmul.mubr.msk.f32.gmra.mrb[92].mxu1 %vm522_vm1, %v3182_v49  ;;  %v3561_v49 = vpop.permute.xlu1 %371 }
  0xda   : > { %1304 = vmatprep.mubr.f32.mxu0 %v2847_v0  ;;  %1561 = vmatprep.mubr.f32.mxu1 %v2847_v0 }
  0xdd   : > { %2649 = vmatmul.mubr.msk.f32.gmra.mrb[94].mxu0 %vm522_vm1, %v3196_v51  ;;  %2683 = vmatmul.mubr.msk.f32.gmra.mrb[94].mxu1 %vm522_vm1, %v3196_v51 }
  0xde   : > { %1310 = vmatprep.mubr.f32.mxu0 %v2847_v0  ;;  %1567 = vmatprep.mubr.f32.mxu1 %v2847_v0 }
  0xe1   : > { %2650 = vmatmul.mubr.msk.f32.gmra.mrb[96].mxu0 %vm522_vm1, %v3210_v53  ;;  %2684 = vmatmul.mubr.msk.f32.gmra.mrb[96].mxu1 %vm522_vm1, %v3210_v53 }
  0xe2   : > { %1316 = vmatprep.mubr.f32.mxu0 %v2847_v0  ;;  %1573 = vmatprep.mubr.f32.mxu1 %v2847_v0 }
  0xe5   : > { %2651 = vmatmul.mubr.msk.f32.gmra.mrb[98].mxu0 %vm522_vm1, %v3224_v55  ;;  %2685 = vmatmul.mubr.msk.f32.gmra.mrb[98].mxu1 %vm522_vm1, %v3224_v55 }
  0xe6   : > { %1322 = vmatprep.mubr.f32.mxu0 %v2847_v0  ;;  %1579 = vmatprep.mubr.f32.mxu1 %v2847_v0 }
  0xe9   : > { %2652 = vmatmul.mubr.msk.f32.gmra.mrb[100].mxu0 %vm522_vm1, %v3238_v57  ;;  %2686 = vmatmul.mubr.msk.f32.gmra.mrb[100].mxu1 %vm522_vm1, %v3238_v57 }
  0xea   : > { %1328 = vmatprep.mubr.f32.mxu0 %v2847_v0  ;;  %1585 = vmatprep.mubr.f32.mxu1 %v2847_v0 }
  0xed   : > { %2653 = vmatmul.mubr.msk.f32.gmra.mrb[102].mxu0 %vm522_vm1, %v3252_v59  ;;  %2687 = vmatmul.mubr.msk.f32.gmra.mrb[102].mxu1 %vm522_vm1, %v3252_v59 }
  0xee   : > { %1334 = vmatprep.mubr.f32.mxu0 %v2847_v0  ;;  %1591 = vmatprep.mubr.f32.mxu1 %v2847_v0 }
  0xf1   : > { %2654 = vmatmul.mubr.msk.f32.gmra.mrb[104].mxu0 %vm522_vm1, %v3266_v61  ;;  %2688 = vmatmul.mubr.msk.f32.gmra.mrb[104].mxu1 %vm522_vm1, %v3266_v61 }
  0xf2   : > { %1340 = vmatprep.mubr.f32.mxu0 %v2847_v0  ;;  %1597 = vmatprep.mubr.f32.mxu1 %v2847_v0 }
  0xf4   : > { %v702_v12 = vpop.f32.mrb[0].mxu0  ;;  %v959_v13 = vpop.f32.mrb[0].mxu1 }
  0xf5   : > { %v703_v14 = vadd.f32 %v702_v12, %v3518_v8  ;;  %v704_v15 = vpop.f32.mrb[1].mxu0  ;;  %2655 = vmatmul.mubr.msk.f32.gmra.mrb[106].mxu0 %vm522_vm1, %v3280_v63  ;;  %2689 = vmatmul.mubr.msk.f32.gmra.mrb[106].mxu1 %vm522_vm1, %v3280_v63  ;;  %v960_v16 = vadd.f32 %v959_v13, %v3518_v8  ;;  %v961_v17 = vpop.f32.mrb[1].mxu1 }
  0xf6   : > { %v705_v18 = vadd.f32 %v704_v15, %v3518_v8  ;;  %1346 = vmatprep.mubr.f32.mxu0 %v2847_v0  ;;  %1603 = vmatprep.mubr.f32.mxu1 %v2847_v0  ;;  %v962_v20 = vadd.f32 %v961_v17, %v3518_v8 }
  0xf7   : > { %v1664_v21 = vmax.f32 %v703_v14, 0.0  ;;  %v1666_v24 = vmax.f32 %v960_v16, 0.0 }
  0xf8   : > { %v1665_v23 = vmax.f32 %v705_v18, 0.0  ;;  %v708_v25 = vpop.f32.mrb[2].mxu0  ;;  %v965_v26 = vpop.f32.mrb[2].mxu1  ;;  %v1667_v33 = vmax.f32 %v962_v20, 0.0 }
  0xf9   : > { %v709_v27 = vadd.f32 %v708_v25, %v3535_v19  ;;  %v710_v28 = vpop.f32.mrb[3].mxu0  ;;  %2656 = vmatmul.mubr.msk.f32.gmra.mrb[108].mxu0 %vm522_vm1, %v3291_v1  ;;  %2690 = vmatmul.mubr.msk.f32.gmra.mrb[108].mxu1 %vm522_vm1, %v3291_v1  ;;  %v966_v29 = vadd.f32 %v965_v26, %v3535_v19  ;;  %v967_v30 = vpop.f32.mrb[3].mxu1 }
  0xfa   : > { %v1920_v31 = vadd.f32 %v1665_v23, %v1664_v21  ;;  %v711_v32 = vadd.f32 %v710_v28, %v3535_v19  ;;  %1352 = vmatprep.mubr.f32.mxu0 %v2847_v0  ;;  %1609 = vmatprep.mubr.f32.mxu1 %v2847_v0  ;;  %v968_v34 = vadd.f32 %v967_v30, %v3535_v19  ;;  %v3589_v28 = vpop.permute.xlu1 %381 }
  0xfb   : > { %v1672_v35 = vmax.f32 %v709_v27, 0.0  ;;  %v1674_v38 = vmax.f32 %v966_v29, 0.0 }
  0xfc   : > { %v1952_v36 = vadd.f32 %v1920_v31, %v1666_v24  ;;  %v1673_v37 = vmax.f32 %v711_v32, 0.0  ;;  %v714_v39 = vpop.f32.mrb[4].mxu0  ;;  %v971_v40 = vpop.f32.mrb[4].mxu1  ;;  %v1675_v48 = vmax.f32 %v968_v34, 0.0 }
  0xfd   : > { %v715_v41 = vadd.f32 %v714_v39, %v3538_v22  ;;  %v716_v42 = vpop.f32.mrb[5].mxu0  ;;  %2657 = vmatmul.mubr.msk.f32.gmra.mrb[110].mxu0 %vm522_vm1, %v3302_v2  ;;  %2691 = vmatmul.mubr.msk.f32.gmra.mrb[110].mxu1 %vm522_vm1, %v3302_v2  ;;  %v972_v43 = vadd.f32 %v971_v40, %v3538_v22  ;;  %v973_v44 = vpop.f32.mrb[5].mxu1 }
  0xfe   : > { %v1921_v45 = vadd.f32 %v1673_v37, %v1672_v35  ;;  %v3556_v46 = vadd.f32 %v1952_v36, %v1667_v33  ;;  %v717_v47 = vadd.f32 %v716_v42, %v3538_v22  ;;  %1358 = vmatprep.mubr.f32.mxu0 %v2847_v0  ;;  %1615 = vmatprep.mubr.f32.mxu1 %v2847_v0  ;;  %v3575_v2 = vpop.permute.xlu0 %376 }
  0xff   : > { %v1680_v50 = vmax.f32 %v715_v41, 0.0  ;;  %v974_v51 = vadd.f32 %v973_v44, %v3538_v22  ;;  %v1682_v54 = vmax.f32 %v972_v43, 0.0 }
 0x100   : > { %v1953_v52 = vadd.f32 %v1921_v45, %v1674_v38  ;;  %v1681_v53 = vmax.f32 %v717_v47, 0.0  ;;  %v720_v55 = vpop.f32.mrb[6].mxu0  ;;  %v977_v56 = vpop.f32.mrb[6].mxu1 }
 0x101   : > { %v721_v57 = vadd.f32 %v720_v55, %v3561_v49  ;;  %v722_v58 = vpop.f32.mrb[7].mxu0  ;;  %2658 = vmatmul.mubr.msk.f32.gmra.mrb[112].mxu0 %vm522_vm1, %v3313_v3  ;;  %2692 = vmatmul.mubr.msk.f32.gmra.mrb[112].mxu1 %vm522_vm1, %v3313_v3  ;;  %v978_v59 = vadd.f32 %v977_v56, %v3561_v49  ;;  %v979_v60 = vpop.f32.mrb[7].mxu1  ;;  %v1683_v1 = vmax.f32 %v974_v51, 0.0 }
 0x102   : > { %v1922_v61 = vadd.f32 %v1681_v53, %v1680_v50  ;;  %v3570_v62 = vadd.f32 %v1953_v52, %v1675_v48  ;;  %v723_v63 = vadd.f32 %v722_v58, %v3561_v49  ;;  %1364 = vmatprep.mubr.f32.mxu0 %v2847_v0  ;;  %1621 = vmatprep.mubr.f32.mxu1 %v2847_v0  ;;  %v3603_v43 = vpop.permute.xlu0 %386 }
 0x103   : > { %v1688_v12 = vmax.f32 %v721_v57, 0.0  ;;  %v980_v13 = vadd.f32 %v979_v60, %v3561_v49  ;;  %v1690_v15 = vmax.f32 %v978_v59, 0.0  ;;  %v3617_v60 = vpop.permute.xlu1 %391 }
 0x104   : > { %v1954_v14 = vadd.f32 %v1922_v61, %v1682_v54  ;;  %v1689_v3 = vmax.f32 %v723_v63, 0.0  ;;  %v726_v16 = vpop.f32.mrb[8].mxu0  ;;  %v983_v17 = vpop.f32.mrb[8].mxu1 }
 0x105   : > { %v727_v18 = vadd.f32 %v726_v16, %v3575_v2  ;;  %v728_v20 = vpop.f32.mrb[9].mxu0  ;;  %2659 = vmatmul.mubr.msk.f32.gmra.mrb[114].mxu0 %vm522_vm1, %v3324_v4  ;;  %2693 = vmatmul.mubr.msk.f32.gmra.mrb[114].mxu1 %vm522_vm1, %v3324_v4  ;;  %v984_v21 = vadd.f32 %v983_v17, %v3575_v2  ;;  %v985_v23 = vpop.f32.mrb[9].mxu1  ;;  %v1691_v27 = vmax.f32 %v980_v13, 0.0 }
 0x106   : > { %v1923_v24 = vadd.f32 %v1689_v3, %v1688_v12  ;;  %v3584_v25 = vadd.f32 %v1954_v14, %v1683_v1  ;;  %v729_v26 = vadd.f32 %v728_v20, %v3575_v2  ;;  %1370 = vmatprep.mubr.f32.mxu0 %v2847_v0  ;;  %1627 = vmatprep.mubr.f32.mxu1 %v2847_v0 }
 0x107   : > { %v1696_v29 = vmax.f32 %v727_v18, 0.0  ;;  %v986_v30 = vadd.f32 %v985_v23, %v3575_v2  ;;  %v1698_v32 = vmax.f32 %v984_v21, 0.0 }
 0x108   : > { %v1955_v31 = vadd.f32 %v1923_v24, %v1690_v15  ;;  %v1697_v4 = vmax.f32 %v729_v26, 0.0  ;;  %v732_v33 = vpop.f32.mrb[10].mxu0  ;;  %v989_v34 = vpop.f32.mrb[10].mxu1 }
 0x109   : > { %v733_v35 = vadd.f32 %v732_v33, %v3589_v28  ;;  %v734_v36 = vpop.f32.mrb[11].mxu0  ;;  %2660 = vmatmul.mubr.msk.f32.gmra.mrb[116].mxu0 %vm522_vm1, %v3335_v5  ;;  %2694 = vmatmul.mubr.msk.f32.gmra.mrb[116].mxu1 %vm522_vm1, %v3335_v5  ;;  %v990_v37 = vadd.f32 %v989_v34, %v3589_v28  ;;  %v991_v38 = vpop.f32.mrb[11].mxu1  ;;  %v1699_v42 = vmax.f32 %v986_v30, 0.0 }
 0x10a   : > { %v1924_v39 = vadd.f32 %v1697_v4, %v1696_v29  ;;  %v3598_v40 = vadd.f32 %v1955_v31, %v1691_v27  ;;  %v735_v41 = vadd.f32 %v734_v36, %v3589_v28  ;;  %1376 = vmatprep.mubr.f32.mxu0 %v2847_v0  ;;  %1633 = vmatprep.mubr.f32.mxu1 %v2847_v0  ;;  %v3631_v24 = vpop.permute.xlu0 %396 }
 0x10b   : > { %v1704_v44 = vmax.f32 %v733_v35, 0.0  ;;  %v992_v45 = vadd.f32 %v991_v38, %v3589_v28  ;;  %v1706_v48 = vmax.f32 %v990_v37, 0.0 }
 0x10c   : > { %v1956_v47 = vadd.f32 %v1924_v39, %v1698_v32  ;;  %v1705_v5 = vmax.f32 %v735_v41, 0.0  ;;  %v738_v50 = vpop.f32.mrb[12].mxu0  ;;  %v995_v51 = vpop.f32.mrb[12].mxu1 }
 0x10d   : > { %v739_v52 = vadd.f32 %v738_v50, %v3603_v43  ;;  %v740_v53 = vpop.f32.mrb[13].mxu0  ;;  %2661 = vmatmul.mubr.msk.f32.gmra.mrb[118].mxu0 %vm522_vm1, %v3346_v6  ;;  %2695 = vmatmul.mubr.msk.f32.gmra.mrb[118].mxu1 %vm522_vm1, %v3346_v6  ;;  %v996_v54 = vadd.f32 %v995_v51, %v3603_v43  ;;  %v997_v55 = vpop.f32.mrb[13].mxu1  ;;  %v1707_v59 = vmax.f32 %v992_v45, 0.0 }
 0x10e   : > { %v1925_v56 = vadd.f32 %v1705_v5, %v1704_v44  ;;  %v3612_v57 = vadd.f32 %v1956_v47, %v1699_v42  ;;  %v741_v58 = vadd.f32 %v740_v53, %v3603_v43  ;;  %1382 = vmatprep.mubr.f32.mxu0 %v2847_v0  ;;  %1639 = vmatprep.mubr.f32.mxu1 %v2847_v0  ;;  %v3645_v41 = vpop.permute.xlu1 %401 }
 0x10f   : > { %v1712_v61 = vmax.f32 %v739_v52, 0.0  ;;  %v998_v63 = vadd.f32 %v997_v55, %v3603_v43  ;;  %v1714_v12 = vmax.f32 %v996_v54, 0.0 }
 0x110   : > { %v1957_v1 = vadd.f32 %v1925_v56, %v1706_v48  ;;  %v1713_v6 = vmax.f32 %v741_v58, 0.0  ;;  %v744_v13 = vpop.f32.mrb[14].mxu0  ;;  %v1001_v14 = vpop.f32.mrb[14].mxu1 }
 0x111   : > { %v745_v3 = vadd.f32 %v744_v13, %v3617_v60  ;;  %v746_v15 = vpop.f32.mrb[15].mxu0  ;;  %2662 = vmatmul.mubr.msk.f32.gmra.mrb[120].mxu0 %vm522_vm1, %v3357_v7  ;;  %2696 = vmatmul.mubr.msk.f32.gmra.mrb[120].mxu1 %vm522_vm1, %v3357_v7  ;;  %v1002_v16 = vadd.f32 %v1001_v14, %v3617_v60  ;;  %v1003_v17 = vpop.f32.mrb[15].mxu1  ;;  %v1715_v23 = vmax.f32 %v998_v63, 0.0 }
 0x112   : > { %v1926_v18 = vadd.f32 %v1713_v6, %v1712_v61  ;;  %v3626_v20 = vadd.f32 %v1957_v1, %v1707_v59  ;;  %v747_v21 = vadd.f32 %v746_v15, %v3617_v60  ;;  %1388 = vmatprep.mubr.f32.mxu0 %v2847_v0  ;;  %1645 = vmatprep.mubr.f32.mxu1 %v2847_v0  ;;  %v3659_v59 = vpop.permute.xlu0 %406 }
 0x113   : > { %v1720_v26 = vmax.f32 %v745_v3, 0.0  ;;  %v1004_v27 = vadd.f32 %v1003_v17, %v3617_v60  ;;  %v1722_v30 = vmax.f32 %v1002_v16, 0.0 }
 0x114   : > { %v1958_v29 = vadd.f32 %v1926_v18, %v1714_v12  ;;  %v1721_v7 = vmax.f32 %v747_v21, 0.0  ;;  %v750_v31 = vpop.f32.mrb[16].mxu0  ;;  %v1007_v4 = vpop.f32.mrb[16].mxu1 }
 0x115   : > { %v751_v32 = vadd.f32 %v750_v31, %v3631_v24  ;;  %v752_v33 = vpop.f32.mrb[17].mxu0  ;;  %2663 = vmatmul.mubr.msk.f32.gmra.mrb[122].mxu0 %vm522_vm1, %v3368_v9  ;;  %2697 = vmatmul.mubr.msk.f32.gmra.mrb[122].mxu1 %vm522_vm1, %v3368_v9  ;;  %v1008_v34 = vadd.f32 %v1007_v4, %v3631_v24  ;;  %v1009_v35 = vpop.f32.mrb[17].mxu1  ;;  %v1723_v39 = vmax.f32 %v1004_v27, 0.0 }
 0x116   : > { %v1927_v36 = vadd.f32 %v1721_v7, %v1720_v26  ;;  %v3640_v37 = vadd.f32 %v1958_v29, %v1715_v23  ;;  %v753_v38 = vadd.f32 %v752_v33, %v3631_v24  ;;  %1394 = vmatprep.mubr.f32.mxu0 %v2847_v0  ;;  %1651 = vmatprep.mubr.f32.mxu1 %v2847_v0  ;;  %v3671_v23 = vpop.permute.xlu1 %411 }
 0x117   : > { %v1728_v42 = vmax.f32 %v751_v32, 0.0  ;;  %v1010_v44 = vadd.f32 %v1009_v35, %v3631_v24  ;;  %v1730_v47 = vmax.f32 %v1008_v34, 0.0 }
 0x118   : > { %v1959_v45 = vadd.f32 %v1927_v36, %v1722_v30  ;;  %v1729_v9 = vmax.f32 %v753_v38, 0.0  ;;  %v756_v5 = vpop.f32.mrb[18].mxu0  ;;  %v1013_v48 = vpop.f32.mrb[18].mxu1 }
 0x119   : > { %v757_v50 = vadd.f32 %v756_v5, %v3645_v41  ;;  %v758_v51 = vpop.f32.mrb[19].mxu0  ;;  %2664 = vmatmul.mubr.msk.f32.gmra.mrb[124].mxu0 %vm522_vm1, %v3379_v10  ;;  %2698 = vmatmul.mubr.msk.f32.gmra.mrb[124].mxu1 %vm522_vm1, %v3379_v10  ;;  %v1014_v52 = vadd.f32 %v1013_v48, %v3645_v41  ;;  %v1015_v53 = vpop.f32.mrb[19].mxu1  ;;  %v1731_v58 = vmax.f32 %v1010_v44, 0.0 }
 0x11a   : > { %v1928_v54 = vadd.f32 %v1729_v9, %v1728_v42  ;;  %v3654_v55 = vadd.f32 %v1959_v45, %v1723_v39  ;;  %v759_v56 = vadd.f32 %v758_v51, %v3645_v41  ;;  %1400 = vmatprep.mubr.f32.mxu0 %v2847_v0  ;;  %1657 = vmatprep.mubr.f32.mxu1 %v2847_v0  ;;  %v3679_v42 = vpop.permute.xlu0 %416 }
 0x11b   : > { %v1736_v61 = vmax.f32 %v757_v50, 0.0  ;;  %v1016_v63 = vadd.f32 %v1015_v53, %v3645_v41  ;;  %v1738_v6 = vmax.f32 %v1014_v52, 0.0 }
 0x11c   : > { %v1960_v1 = vadd.f32 %v1928_v54, %v1730_v47  ;;  %v1737_v10 = vmax.f32 %v759_v56, 0.0  ;;  %v762_v12 = vpop.f32.mrb[20].mxu0  ;;  %v1019_v13 = vpop.f32.mrb[20].mxu1 }
 0x11d   : > { %v763_v14 = vadd.f32 %v762_v12, %v3659_v59  ;;  %v764_v3 = vpop.f32.mrb[21].mxu0  ;;  %v1739_v15 = vmax.f32 %v1016_v63, 0.0  ;;  %2665 = vmatmul.mubr.msk.f32.gmra.mrb[126].mxu0 %vm522_vm1, %v3390_v11  ;;  %2699 = vmatmul.mubr.msk.f32.gmra.mrb[126].mxu1 %vm522_vm1, %v3390_v11  ;;  %v1020_v0 = vadd.f32 %v1019_v13, %v3659_v59  ;;  %v1021_v16 = vpop.f32.mrb[21].mxu1 }
 0x11e   : > { %v1929_v17 = vadd.f32 %v1737_v10, %v1736_v61  ;;  %v3668_v18 = vadd.f32 %v1960_v1, %v1731_v58  ;;  %v765_v21 = vadd.f32 %v764_v3, %v3659_v59  ;;  %v1022_v26 = vadd.f32 %v1021_v16, %v3659_v59  ;;  %v3687_v1 = vpop.permute.xlu1 %421 }
 0x11f   : > { %v1744_v27 = vmax.f32 %v763_v14, 0.0  ;;  %v1746_v30 = vmax.f32 %v1020_v0, 0.0 }
 0x120   : > { %v1961_v29 = vadd.f32 %v1929_v17, %v1738_v6  ;;  %v1745_v7 = vmax.f32 %v765_v21, 0.0  ;;  %v768_v31 = vpop.f32.mrb[22].mxu0  ;;  %v1025_v4 = vpop.f32.mrb[22].mxu1  ;;  %v1747_v33 = vmax.f32 %v1022_v26, 0.0 }
 0x121   : > { %v769_v11 = vadd.f32 %v768_v31, %v3671_v23  ;;  %v770_v32 = vpop.f32.mrb[23].mxu0  ;;  %v1026_v34 = vadd.f32 %v1025_v4, %v3671_v23  ;;  %v1027_v35 = vpop.f32.mrb[23].mxu1 }
 0x122   : > { %v1930_v36 = vadd.f32 %v1745_v7, %v1744_v27  ;;  %v3676_v38 = vadd.f32 %v1961_v29, %v1739_v15  ;;  %v771_v39 = vadd.f32 %v770_v32, %v3671_v23  ;;  %v1028_v44 = vadd.f32 %v1027_v35, %v3671_v23 }
 0x123   : > { %v1752_v45 = vmax.f32 %v769_v11, 0.0  ;;  %v1754_v5 = vmax.f32 %v1026_v34, 0.0 }
 0x124   : > { %v1962_v9 = vadd.f32 %v1930_v36, %v1746_v30  ;;  %v1753_v47 = vmax.f32 %v771_v39, 0.0  ;;  %v774_v48 = vpop.f32.mrb[24].mxu0  ;;  %v1031_v50 = vpop.f32.mrb[24].mxu1  ;;  %v1755_v53 = vmax.f32 %v1028_v44, 0.0 }
 0x125   : > { %v775_v51 = vadd.f32 %v774_v48, %v3679_v42  ;;  %v776_v52 = vpop.f32.mrb[25].mxu0  ;;  %v1032_v54 = vadd.f32 %v1031_v50, %v3679_v42  ;;  %v1033_v56 = vpop.f32.mrb[25].mxu1 }
 0x126   : > { %v1931_v58 = vadd.f32 %v1753_v47, %v1752_v45  ;;  %v3684_v61 = vadd.f32 %v1962_v9, %v1747_v33  ;;  %v777_v63 = vadd.f32 %v776_v52, %v3679_v42  ;;  %v1034_v10 = vadd.f32 %v1033_v56, %v3679_v42  ;;  %v3695_v30 = vpop.permute.xlu0 %426  ;;  %v3703_v50 = vpop.permute.xlu1 %431 }
 0x127   : > { %v1760_v6 = vmax.f32 %v775_v51, 0.0  ;;  %v1762_v14 = vmax.f32 %v1032_v54, 0.0 }
 0x128   : > { %v1963_v12 = vadd.f32 %v1931_v58, %v1754_v5  ;;  %v1761_v13 = vmax.f32 %v777_v63, 0.0  ;;  %v780_v3 = vpop.f32.mrb[26].mxu0  ;;  %v1037_v15 = vpop.f32.mrb[26].mxu1  ;;  %v1763_v17 = vmax.f32 %v1034_v10, 0.0 }
 0x129   : > { %v781_v0 = vadd.f32 %v780_v3, %v3687_v1  ;;  %v782_v16 = vpop.f32.mrb[27].mxu0  ;;  %v1038_v21 = vadd.f32 %v1037_v15, %v3687_v1  ;;  %v1039_v26 = vpop.f32.mrb[27].mxu1 }
 0x12a   : > { %v1932_v27 = vadd.f32 %v1761_v13, %v1760_v6  ;;  %v3692_v29 = vadd.f32 %v1963_v12, %v1755_v53  ;;  %v783_v7 = vadd.f32 %v782_v16, %v3687_v1  ;;  %v1040_v31 = vadd.f32 %v1039_v26, %v3687_v1  ;;  %v3711_v16 = vpop.permute.xlu0 %436 }
 0x12b   : > { %v1768_v4 = vmax.f32 %v781_v0, 0.0  ;;  %v1770_v33 = vmax.f32 %v1038_v21, 0.0 }
 0x12c   : > { %v1964_v11 = vadd.f32 %v1932_v27, %v1762_v14  ;;  %v1769_v32 = vmax.f32 %v783_v7, 0.0  ;;  %v786_v34 = vpop.f32.mrb[28].mxu0  ;;  %v1043_v35 = vpop.f32.mrb[28].mxu1  ;;  %v1771_v44 = vmax.f32 %v1040_v31, 0.0 }
 0x12d   : > { %v787_v36 = vadd.f32 %v786_v34, %v3695_v30  ;;  %v788_v39 = vpop.f32.mrb[29].mxu0  ;;  %v1044_v45 = vadd.f32 %v1043_v35, %v3695_v30  ;;  %v1045_v9 = vpop.f32.mrb[29].mxu1 }
 0x12e   : > { %v1933_v47 = vadd.f32 %v1769_v32, %v1768_v4  ;;  %v3700_v5 = vadd.f32 %v1964_v11, %v1763_v17  ;;  %v789_v48 = vadd.f32 %v788_v39, %v3695_v30  ;;  %v1046_v51 = vadd.f32 %v1045_v9, %v3695_v30 }
 0x12f   : > { %v1776_v52 = vmax.f32 %v787_v36, 0.0  ;;  %v1778_v56 = vmax.f32 %v1044_v45, 0.0  ;;  %v3719_v45 = vpop.permute.xlu1 %441 }
 0x130   : > { %v1965_v53 = vadd.f32 %v1933_v47, %v1770_v33  ;;  %v1777_v54 = vmax.f32 %v789_v48, 0.0  ;;  %v792_v58 = vpop.f32.mrb[30].mxu0  ;;  %v1049_v63 = vpop.f32.mrb[30].mxu1  ;;  %v1779_v12 = vmax.f32 %v1046_v51, 0.0 }
 0x131   : > { %v793_v10 = vadd.f32 %v792_v58, %v3703_v50  ;;  %v794_v6 = vpop.f32.mrb[31].mxu0  ;;  %v1050_v13 = vadd.f32 %v1049_v63, %v3703_v50  ;;  %v1051_v14 = vpop.f32.mrb[31].mxu1 }
 0x132   : > { %v1934_v3 = vadd.f32 %v1777_v54, %v1776_v52  ;;  %v3708_v15 = vadd.f32 %v1965_v53, %v1771_v44  ;;  %v795_v0 = vadd.f32 %v794_v6, %v3703_v50  ;;  %v1052_v17 = vadd.f32 %v1051_v14, %v3703_v50 }
 0x133   : > { %v1784_v21 = vmax.f32 %v793_v10, 0.0  ;;  %v1786_v7 = vmax.f32 %v1050_v13, 0.0 }
 0x134   : > { %v1966_v26 = vadd.f32 %v1934_v3, %v1778_v56  ;;  %v1785_v27 = vmax.f32 %v795_v0, 0.0  ;;  %v798_v31 = vpop.f32.mrb[32].mxu0  ;;  %v1055_v4 = vpop.f32.mrb[32].mxu1  ;;  %v1787_v33 = vmax.f32 %v1052_v17, 0.0 }
 0x135   : > { %v799_v11 = vadd.f32 %v798_v31, %v3711_v16  ;;  %v800_v32 = vpop.f32.mrb[33].mxu0  ;;  %v1056_v34 = vadd.f32 %v1055_v4, %v3711_v16  ;;  %v1057_v35 = vpop.f32.mrb[33].mxu1 }
 0x136   : > { %v1935_v36 = vadd.f32 %v1785_v27, %v1784_v21  ;;  %v3716_v39 = vadd.f32 %v1966_v26, %v1779_v12  ;;  %v801_v44 = vadd.f32 %v800_v32, %v3711_v16  ;;  %v1058_v9 = vadd.f32 %v1057_v35, %v3711_v16  ;;  %v3727_v3 = vpop.permute.xlu0 %446 }
 0x137   : > { %v1792_v47 = vmax.f32 %v799_v11, 0.0  ;;  %v1794_v52 = vmax.f32 %v1056_v34, 0.0 }
 0x138   : > { %v1967_v48 = vadd.f32 %v1935_v36, %v1786_v7  ;;  %v1793_v51 = vmax.f32 %v801_v44, 0.0  ;;  %v804_v53 = vpop.f32.mrb[34].mxu0  ;;  %v1061_v54 = vpop.f32.mrb[34].mxu1  ;;  %v1795_v63 = vmax.f32 %v1058_v9, 0.0 }
 0x139   : > { %v805_v56 = vadd.f32 %v804_v53, %v3719_v45  ;;  %v806_v58 = vpop.f32.mrb[35].mxu0  ;;  %v1062_v10 = vadd.f32 %v1061_v54, %v3719_v45  ;;  %v1063_v6 = vpop.f32.mrb[35].mxu1 }
 0x13a   : > { %v1936_v12 = vadd.f32 %v1793_v51, %v1792_v47  ;;  %v3724_v13 = vadd.f32 %v1967_v48, %v1787_v33  ;;  %v807_v14 = vadd.f32 %v806_v58, %v3719_v45  ;;  %v1064_v0 = vadd.f32 %v1063_v6, %v3719_v45  ;;  %v3735_v9 = vpop.permute.xlu1 %451 }
 0x13b   : > { %v1800_v17 = vmax.f32 %v805_v56, 0.0  ;;  %v1802_v27 = vmax.f32 %v1062_v10, 0.0  ;;  %4187 = vst [vmem:[#allocation6_spill] sm:$0xff] %v3735_v9 }
 0x13c   : > { %v1968_v21 = vadd.f32 %v1936_v12, %v1794_v52  ;;  %v1801_v26 = vmax.f32 %v807_v14, 0.0  ;;  %v810_v7 = vpop.f32.mrb[36].mxu0  ;;  %v1067_v31 = vpop.f32.mrb[36].mxu1  ;;  %v1803_v32 = vmax.f32 %v1064_v0, 0.0 }
 0x13d   : > { %v811_v4 = vadd.f32 %v810_v7, %v3727_v3  ;;  %v812_v11 = vpop.f32.mrb[37].mxu0  ;;  %v1068_v34 = vadd.f32 %v1067_v31, %v3727_v3  ;;  %v1069_v33 = vpop.f32.mrb[37].mxu1 }
 0x13e   : > { %v1937_v35 = vadd.f32 %v1801_v26, %v1800_v17  ;;  %v3732_v36 = vadd.f32 %v1968_v21, %v1795_v63  ;;  %v813_v44 = vadd.f32 %v812_v11, %v3727_v3  ;;  %v1070_v47 = vadd.f32 %v1069_v33, %v3727_v3  ;;  %v3743_v21 = vpop.permute.xlu0 %456 }
 0x13f   : > { %v1808_v48 = vmax.f32 %v811_v4, 0.0  ;;  %v1810_v53 = vmax.f32 %v1068_v34, 0.0  ;;  %4188 = vst [vmem:[#allocation7_spill] sm:$0xff] %v3743_v21 }
 0x140   : > { %v1969_v51 = vadd.f32 %v1937_v35, %v1802_v27  ;;  %v1809_v52 = vmax.f32 %v813_v44, 0.0  ;;  %v816_v54 = vpop.f32.mrb[38].mxu0  ;;  %v1073_v56 = vpop.f32.mrb[38].mxu1  ;;  %v1811_v6 = vmax.f32 %v1070_v47, 0.0 }
 0x141   : > { %v817_v58 = vadd.f32 %v816_v54, %v3735_v9  ;;  %v818_v10 = vpop.f32.mrb[39].mxu0  ;;  %v1074_v12 = vadd.f32 %v1073_v56, %v3735_v9  ;;  %v1075_v63 = vpop.f32.mrb[39].mxu1 }
 0x142   : > { %v1938_v14 = vadd.f32 %v1809_v52, %v1808_v48  ;;  %v3740_v0 = vadd.f32 %v1969_v51, %v1803_v32  ;;  %v819_v17 = vadd.f32 %v818_v10, %v3735_v9  ;;  %v1076_v26 = vadd.f32 %v1075_v63, %v3735_v9  ;;  %v3751_v54 = vpop.permute.xlu1 %461 }
 0x143   : > { %v1816_v27 = vmax.f32 %v817_v58, 0.0  ;;  %v1818_v4 = vmax.f32 %v1074_v12, 0.0  ;;  %4189 = vst [vmem:[#allocation8_spill] sm:$0xff] %v3751_v54 }
 0x144   : > { %v1970_v7 = vadd.f32 %v1938_v14, %v1810_v53  ;;  %v1817_v31 = vmax.f32 %v819_v17, 0.0  ;;  %v822_v11 = vpop.f32.mrb[40].mxu0  ;;  %v1079_v34 = vpop.f32.mrb[40].mxu1  ;;  %v1819_v44 = vmax.f32 %v1076_v26, 0.0 }
 0x145   : > { %v823_v33 = vadd.f32 %v822_v11, %v3743_v21  ;;  %v824_v35 = vpop.f32.mrb[41].mxu0  ;;  %v1080_v47 = vadd.f32 %v1079_v34, %v3743_v21  ;;  %v1081_v32 = vpop.f32.mrb[41].mxu1 }
 0x146   : > { %v1939_v48 = vadd.f32 %v1817_v31, %v1816_v27  ;;  %v3748_v51 = vadd.f32 %v1970_v7, %v1811_v6  ;;  %v825_v52 = vadd.f32 %v824_v35, %v3743_v21  ;;  %v1082_v53 = vadd.f32 %v1081_v32, %v3743_v21  ;;  %v3759_v35 = vpop.permute.xlu0 %466 }
 0x147   : > { %v1824_v56 = vmax.f32 %v823_v33, 0.0  ;;  %v1826_v12 = vmax.f32 %v1080_v47, 0.0  ;;  %4191 = vst [vmem:[#allocation10_spill] sm:$0xff] %v3759_v35 }
 0x148   : > { %v1971_v58 = vadd.f32 %v1939_v48, %v1818_v4  ;;  %v1825_v10 = vmax.f32 %v825_v52, 0.0  ;;  %v828_v63 = vpop.f32.mrb[42].mxu0  ;;  %v1085_v14 = vpop.f32.mrb[42].mxu1  ;;  %v1827_v11 = vmax.f32 %v1082_v53, 0.0 }
 0x149   : > { %v829_v17 = vadd.f32 %v828_v63, %v3751_v54  ;;  %v830_v26 = vpop.f32.mrb[43].mxu0  ;;  %v1086_v27 = vadd.f32 %v1085_v14, %v3751_v54  ;;  %v1087_v6 = vpop.f32.mrb[43].mxu1 }
 0x14a   : > { %v1940_v7 = vadd.f32 %v1825_v10, %v1824_v56  ;;  %v3756_v31 = vadd.f32 %v1971_v58, %v1819_v44  ;;  %v831_v34 = vadd.f32 %v830_v26, %v3751_v54  ;;  %v1088_v4 = vadd.f32 %v1087_v6, %v3751_v54 }
 0x14b   : > { %v1832_v33 = vmax.f32 %v829_v17, 0.0  ;;  %v1834_v48 = vmax.f32 %v1086_v27, 0.0 }
 0x14c   : > { %4190 = vst [vmem:[#allocation9_spill] sm:$0xff] %v3756_v31  ;;  %v1972_v47 = vadd.f32 %v1940_v7, %v1826_v12  ;;  %v1833_v32 = vmax.f32 %v831_v34, 0.0  ;;  %v834_v52 = vpop.f32.mrb[44].mxu0  ;;  %v1091_v63 = vpop.f32.mrb[44].mxu1  ;;  %v1835_v14 = vmax.f32 %v1088_v4, 0.0 }
 0x14d   : > { %v835_v53 = vadd.f32 %v834_v52, %v3759_v35  ;;  %v836_v21 = vpop.f32.mrb[45].mxu0  ;;  %v1092_v56 = vadd.f32 %v1091_v63, %v3759_v35  ;;  %v1093_v44 = vpop.f32.mrb[45].mxu1 }
 0x14e   : > { %v1941_v58 = vadd.f32 %v1833_v32, %v1832_v33  ;;  %v3764_v10 = vadd.f32 %v1972_v47, %v1827_v11  ;;  %v837_v26 = vadd.f32 %v836_v21, %v3759_v35  ;;  %v3767_v31 = vpop.permute.xlu1 %471  ;;  %v1094_v12 = vadd.f32 %v1093_v44, %v3759_v35 }
 0x14f   : > { %4193 = vst [vmem:[#allocation12_spill] sm:$0xff] %v3767_v31  ;;  %v1840_v17 = vmax.f32 %v835_v53, 0.0  ;;  %v1842_v7 = vmax.f32 %v1092_v56, 0.0 }
 0x150   : > { %4192 = vst [vmem:[#allocation11_spill] sm:$0xff] %v3764_v10  ;;  %v1973_v27 = vadd.f32 %v1941_v58, %v1834_v48  ;;  %v1841_v6 = vmax.f32 %v837_v26, 0.0  ;;  %v840_v34 = vpop.f32.mrb[46].mxu0  ;;  %v1097_v52 = vpop.f32.mrb[46].mxu1  ;;  %v1843_v63 = vmax.f32 %v1094_v12, 0.0 }
 0x151   : > { %v841_v4 = vadd.f32 %v840_v34, %v3767_v31  ;;  %v842_v54 = vpop.f32.mrb[47].mxu0  ;;  %v1098_v33 = vadd.f32 %v1097_v52, %v3767_v31  ;;  %v1099_v11 = vpop.f32.mrb[47].mxu1 }
 0x152   : > { %v1942_v47 = vadd.f32 %v1841_v6, %v1840_v17  ;;  %v3772_v32 = vadd.f32 %v1973_v27, %v1835_v14  ;;  %v843_v21 = vadd.f32 %v842_v54, %v3767_v31  ;;  %v3775_v10 = vpop.permute.xlu0 %476  ;;  %v1100_v48 = vadd.f32 %v1099_v11, %v3767_v31 }
 0x153   : > { %4195 = vst [vmem:[#allocation14_spill] sm:$0xff] %v3775_v10  ;;  %v1848_v53 = vmax.f32 %v841_v4, 0.0  ;;  %v1850_v58 = vmax.f32 %v1098_v33, 0.0 }
 0x154   : > { %4194 = vst [vmem:[#allocation13_spill] sm:$0xff] %v3772_v32  ;;  %v1974_v56 = vadd.f32 %v1942_v47, %v1842_v7  ;;  %v1849_v44 = vmax.f32 %v843_v21, 0.0  ;;  %v846_v26 = vpop.f32.mrb[48].mxu0  ;;  %v1103_v34 = vpop.f32.mrb[48].mxu1  ;;  %v1851_v52 = vmax.f32 %v1100_v48, 0.0 }
 0x155   : > { %v847_v12 = vadd.f32 %v846_v26, %v3775_v10  ;;  %v848_v35 = vpop.f32.mrb[49].mxu0  ;;  %v1104_v17 = vadd.f32 %v1103_v34, %v3775_v10  ;;  %v1105_v14 = vpop.f32.mrb[49].mxu1 }
 0x156   : > { %v1943_v27 = vadd.f32 %v1849_v44, %v1848_v53  ;;  %v3780_v6 = vadd.f32 %v1974_v56, %v1843_v63  ;;  %v849_v54 = vadd.f32 %v848_v35, %v3775_v10  ;;  %v3783_v32 = vpop.permute.xlu1 %481  ;;  %v1106_v7 = vadd.f32 %v1105_v14, %v3775_v10 }
 0x157   : > { %4197 = vst [vmem:[#allocation16_spill] sm:$0xff] %v3783_v32  ;;  %v1856_v4 = vmax.f32 %v847_v12, 0.0  ;;  %v1858_v47 = vmax.f32 %v1104_v17, 0.0 }
 0x158   : > { %4196 = vst [vmem:[#allocation15_spill] sm:$0xff] %v3780_v6  ;;  %v1975_v33 = vadd.f32 %v1943_v27, %v1850_v58  ;;  %v1857_v11 = vmax.f32 %v849_v54, 0.0  ;;  %v852_v21 = vpop.f32.mrb[50].mxu0  ;;  %v1109_v26 = vpop.f32.mrb[50].mxu1  ;;  %v1859_v34 = vmax.f32 %v1106_v7, 0.0 }
 0x159   : > { %v853_v48 = vadd.f32 %v852_v21, %v3783_v32  ;;  %v854_v31 = vpop.f32.mrb[51].mxu0  ;;  %v1110_v53 = vadd.f32 %v1109_v26, %v3783_v32  ;;  %v1111_v63 = vpop.f32.mrb[51].mxu1 }
 0x15a   : > { %v1944_v56 = vadd.f32 %v1857_v11, %v1856_v4  ;;  %v3788_v44 = vadd.f32 %v1975_v33, %v1851_v52  ;;  %v855_v35 = vadd.f32 %v854_v31, %v3783_v32  ;;  %v3791_v6 = vpop.permute.xlu0 %486  ;;  %v1112_v58 = vadd.f32 %v1111_v63, %v3783_v32 }
 0x15b   : > { %4199 = vst [vmem:[#allocation18_spill] sm:$0xff] %v3791_v6  ;;  %v1864_v12 = vmax.f32 %v853_v48, 0.0  ;;  %v1866_v27 = vmax.f32 %v1110_v53, 0.0 }
 0x15c   : > { %4198 = vst [vmem:[#allocation17_spill] sm:$0xff] %v3788_v44  ;;  %v1976_v17 = vadd.f32 %v1944_v56, %v1858_v47  ;;  %v1865_v14 = vmax.f32 %v855_v35, 0.0  ;;  %v858_v54 = vpop.f32.mrb[52].mxu0  ;;  %v1115_v21 = vpop.f32.mrb[52].mxu1  ;;  %v1867_v26 = vmax.f32 %v1112_v58, 0.0 }
 0x15d   : > { %v859_v7 = vadd.f32 %v858_v54, %v3791_v6  ;;  %v860_v10 = vpop.f32.mrb[53].mxu0  ;;  %v1116_v4 = vadd.f32 %v1115_v21, %v3791_v6  ;;  %v1117_v52 = vpop.f32.mrb[53].mxu1 }
 0x15e   : > { %v1945_v33 = vadd.f32 %v1865_v14, %v1864_v12  ;;  %v3796_v11 = vadd.f32 %v1976_v17, %v1859_v34  ;;  %v861_v31 = vadd.f32 %v860_v10, %v3791_v6  ;;  %v3799_v44 = vpop.permute.xlu1 %491  ;;  %v1118_v47 = vadd.f32 %v1117_v52, %v3791_v6 }
 0x15f   : > { %4201 = vst [vmem:[#allocation20_spill] sm:$0xff] %v3799_v44  ;;  %v1872_v48 = vmax.f32 %v859_v7, 0.0  ;;  %v1874_v56 = vmax.f32 %v1116_v4, 0.0 }
 0x160   : > { %4200 = vst [vmem:[#allocation19_spill] sm:$0xff] %v3796_v11  ;;  %v1977_v53 = vadd.f32 %v1945_v33, %v1866_v27  ;;  %v1873_v63 = vmax.f32 %v861_v31, 0.0  ;;  %v864_v35 = vpop.f32.mrb[54].mxu0  ;;  %v1121_v54 = vpop.f32.mrb[54].mxu1  ;;  %v1875_v21 = vmax.f32 %v1118_v47, 0.0 }
 0x161   : > { %v865_v58 = vadd.f32 %v864_v35, %v3799_v44  ;;  %v866_v32 = vpop.f32.mrb[55].mxu0  ;;  %v1122_v12 = vadd.f32 %v1121_v54, %v3799_v44  ;;  %v1123_v34 = vpop.f32.mrb[55].mxu1 }
 0x162   : > { %v1946_v17 = vadd.f32 %v1873_v63, %v1872_v48  ;;  %v3804_v14 = vadd.f32 %v1977_v53, %v1867_v26  ;;  %v867_v10 = vadd.f32 %v866_v32, %v3799_v44  ;;  %v3807_v11 = vpop.permute.xlu0 %496  ;;  %v1124_v27 = vadd.f32 %v1123_v34, %v3799_v44 }
 0x163   : > { %4203 = vst [vmem:[#allocation22_spill] sm:$0xff] %v3807_v11  ;;  %v1880_v7 = vmax.f32 %v865_v58, 0.0  ;;  %v1882_v33 = vmax.f32 %v1122_v12, 0.0 }
 0x164   : > { %4202 = vst [vmem:[#allocation21_spill] sm:$0xff] %v3804_v14  ;;  %v1978_v4 = vadd.f32 %v1946_v17, %v1874_v56  ;;  %v1881_v52 = vmax.f32 %v867_v10, 0.0  ;;  %v870_v31 = vpop.f32.mrb[56].mxu0  ;;  %v1127_v35 = vpop.f32.mrb[56].mxu1  ;;  %v1883_v54 = vmax.f32 %v1124_v27, 0.0 }
 0x165   : > { %v871_v47 = vadd.f32 %v870_v31, %v3807_v11  ;;  %v872_v6 = vpop.f32.mrb[57].mxu0  ;;  %v1128_v48 = vadd.f32 %v1127_v35, %v3807_v11  ;;  %v1129_v26 = vpop.f32.mrb[57].mxu1 }
 0x166   : > { %v1947_v53 = vadd.f32 %v1881_v52, %v1880_v7  ;;  %v3812_v63 = vadd.f32 %v1978_v4, %v1875_v21  ;;  %v873_v32 = vadd.f32 %v872_v6, %v3807_v11  ;;  %v3815_v14 = vpop.permute.xlu1 %501  ;;  %v1130_v56 = vadd.f32 %v1129_v26, %v3807_v11 }
 0x167   : > { %4205 = vst [vmem:[#allocation24_spill] sm:$0xff] %v3815_v14  ;;  %v1888_v58 = vmax.f32 %v871_v47, 0.0  ;;  %v1890_v17 = vmax.f32 %v1128_v48, 0.0 }
 0x168   : > { %4204 = vst [vmem:[#allocation23_spill] sm:$0xff] %v3812_v63  ;;  %v1979_v12 = vadd.f32 %v1947_v53, %v1882_v33  ;;  %v1889_v34 = vmax.f32 %v873_v32, 0.0  ;;  %v876_v10 = vpop.f32.mrb[58].mxu0  ;;  %v1133_v31 = vpop.f32.mrb[58].mxu1  ;;  %v1891_v35 = vmax.f32 %v1130_v56, 0.0 }
 0x169   : > { %v877_v27 = vadd.f32 %v876_v10, %v3815_v14  ;;  %v878_v44 = vpop.f32.mrb[59].mxu0  ;;  %v1134_v7 = vadd.f32 %v1133_v31, %v3815_v14  ;;  %v1135_v21 = vpop.f32.mrb[59].mxu1 }
 0x16a   : > { %v1948_v4 = vadd.f32 %v1889_v34, %v1888_v58  ;;  %v3820_v52 = vadd.f32 %v1979_v12, %v1883_v54  ;;  %v879_v6 = vadd.f32 %v878_v44, %v3815_v14  ;;  %v3823_v63 = vpop.permute.xlu0 %506  ;;  %v1136_v33 = vadd.f32 %v1135_v21, %v3815_v14 }
 0x16b   : > { %4207 = vst [vmem:[#allocation26_spill] sm:$0xff] %v3823_v63  ;;  %v1896_v47 = vmax.f32 %v877_v27, 0.0  ;;  %v1898_v53 = vmax.f32 %v1134_v7, 0.0 }
 0x16c   : > { %4206 = vst [vmem:[#allocation25_spill] sm:$0xff] %v3820_v52  ;;  %v1980_v48 = vadd.f32 %v1948_v4, %v1890_v17  ;;  %v1897_v26 = vmax.f32 %v879_v6, 0.0  ;;  %v882_v32 = vpop.f32.mrb[60].mxu0  ;;  %v1139_v10 = vpop.f32.mrb[60].mxu1  ;;  %v1899_v31 = vmax.f32 %v1136_v33, 0.0 }
 0x16d   : > { %v883_v56 = vadd.f32 %v882_v32, %v3823_v63  ;;  %v884_v11 = vpop.f32.mrb[61].mxu0  ;;  %v1140_v58 = vadd.f32 %v1139_v10, %v3823_v63  ;;  %v1141_v54 = vpop.f32.mrb[61].mxu1 }
 0x16e   : > { %v1949_v12 = vadd.f32 %v1897_v26, %v1896_v47  ;;  %v3828_v34 = vadd.f32 %v1980_v48, %v1891_v35  ;;  %v885_v44 = vadd.f32 %v884_v11, %v3823_v63  ;;  %v3831_v52 = vpop.permute.xlu1 %511  ;;  %v1142_v17 = vadd.f32 %v1141_v54, %v3823_v63 }
 0x16f   : > { %v1904_v27 = vmax.f32 %v883_v56, 0.0  ;;  %v1906_v4 = vmax.f32 %v1140_v58, 0.0 }
 0x170   : > { %4208 = vst [vmem:[#allocation27_spill] sm:$0xff] %v3828_v34  ;;  %v1981_v7 = vadd.f32 %v1949_v12, %v1898_v53  ;;  %v1905_v21 = vmax.f32 %v885_v44, 0.0  ;;  %v888_v6 = vpop.f32.mrb[62].mxu0  ;;  %v1145_v32 = vpop.f32.mrb[62].mxu1  ;;  %v1907_v10 = vmax.f32 %v1142_v17, 0.0 }
 0x171   : > { %v889_v33 = vadd.f32 %v888_v6, %v3831_v52  ;;  %v890_v14 = vpop.f32.mrb[63].mxu0  ;;  %v1146_v47 = vadd.f32 %v1145_v32, %v3831_v52  ;;  %v1147_v35 = vpop.f32.mrb[63].mxu1 }
 0x172   : > { %v1950_v48 = vadd.f32 %v1905_v21, %v1904_v27  ;;  %v3836_v26 = vadd.f32 %v1981_v7, %v1899_v31  ;;  %v891_v11 = vadd.f32 %v890_v14, %v3831_v52  ;;  %v1148_v54 = vadd.f32 %v1147_v35, %v3831_v52 }
 0x173   : > { %v1912_v56 = vmax.f32 %v889_v33, 0.0  ;;  %v1914_v58 = vmax.f32 %v1146_v47, 0.0 }
 0x174   : > { %v1982_v53 = vadd.f32 %v1950_v48, %v1906_v4  ;;  %v1913_v12 = vmax.f32 %v891_v11, 0.0  ;;  %v1216_v44 = vpop.f32.mrb[64].mxu0  ;;  %v1473_v63 = vpop.f32.mrb[64].mxu1  ;;  %v1915_v31 = vmax.f32 %v1148_v54, 0.0 }
 0x175   : > { %v1217_v6 = vadd.f32 %v1216_v44, %v3518_v8  ;;  %v1218_v34 = vpop.f32.mrb[65].mxu0  ;;  %v1474_v17 = vadd.f32 %v1473_v63, %v3518_v8  ;;  %v1475_v32 = vpop.f32.mrb[65].mxu1 }
 0x176   : > { %v1951_v9 = vadd.f32 %v1913_v12, %v1912_v56  ;;  %v3842_v27 = vadd.f32 %v1982_v53, %v1907_v10  ;;  %v1219_v14 = vadd.f32 %v1218_v34, %v3518_v8  ;;  %v1476_v47 = vadd.f32 %v1475_v32, %v3518_v8 }
 0x177   : > { %v1668_v7 = vmax.f32 %v1217_v6, 0.0  ;;  %v1670_v44 = vmax.f32 %v1474_v17, 0.0 }
 0x178   : > { %v1983_v21 = vadd.f32 %v1951_v9, %v1914_v58  ;;  %v1669_v33 = vmax.f32 %v1219_v14, 0.0  ;;  %v1222_v4 = vpop.f32.mrb[66].mxu0  ;;  %v1479_v35 = vpop.f32.mrb[66].mxu1  ;;  %v1671_v58 = vmax.f32 %v1476_v47, 0.0 }
 0x179   : > { %v2016_v48 = vadd.f32 %v3556_v46, %v1668_v7  ;;  %v1223_v11 = vadd.f32 %v1222_v4, %v3535_v19  ;;  %v1224_v63 = vpop.f32.mrb[67].mxu0  ;;  %v1480_v56 = vadd.f32 %v1479_v35, %v3535_v19  ;;  %v1481_v10 = vpop.f32.mrb[67].mxu1 }
 0x17a   : > { %v3849_v53 = vadd.f32 %v1983_v21, %v1915_v31  ;;  %v1225_v34 = vadd.f32 %v1224_v63, %v3535_v19  ;;  %v1482_v32 = vadd.f32 %v1481_v10, %v3535_v19 }
 0x17b   : > { %v2048_v54 = vadd.f32 %v2016_v48, %v1669_v33  ;;  %v1676_v9 = vmax.f32 %v1223_v11, 0.0  ;;  %v1678_v8 = vmax.f32 %v1480_v56, 0.0 }
 0x17c   : > { %v1677_v12 = vmax.f32 %v1225_v34, 0.0  ;;  %v1228_v6 = vpop.f32.mrb[68].mxu0  ;;  %v1485_v46 = vpop.f32.mrb[68].mxu1  ;;  %v1679_v63 = vmax.f32 %v1482_v32, 0.0 }
 0x17d   : > { %v2017_v14 = vadd.f32 %v3570_v62, %v1676_v9  ;;  %v2080_v17 = vadd.f32 %v2048_v54, %v1670_v44  ;;  %v1229_v7 = vadd.f32 %v1228_v6, %v3538_v22  ;;  %v1230_v4 = vpop.f32.mrb[69].mxu0  ;;  %v1486_v31 = vadd.f32 %v1485_v46, %v3538_v22  ;;  %v1487_v21 = vpop.f32.mrb[69].mxu1 }
 0x17e   : > { %v1231_v35 = vadd.f32 %v1230_v4, %v3538_v22  ;;  %v1488_v19 = vadd.f32 %v1487_v21, %v3538_v22 }
 0x17f   : > { %v2049_v33 = vadd.f32 %v2017_v14, %v1677_v12  ;;  %v1684_v48 = vmax.f32 %v1229_v7, 0.0  ;;  %v2112_v11 = vadd.f32 %v2080_v17, %v1671_v58  ;;  %v1686_v34 = vmax.f32 %v1486_v31, 0.0 }
 0x180   : > { %v1685_v47 = vmax.f32 %v1231_v35, 0.0  ;;  %v1234_v56 = vpop.f32.mrb[70].mxu0  ;;  %v1491_v10 = vpop.f32.mrb[70].mxu1  ;;  %v1687_v7 = vmax.f32 %v1488_v19, 0.0 }
 0x181   : > { %v2018_v62 = vadd.f32 %v3584_v25, %v1684_v48  ;;  %v2081_v44 = vadd.f32 %v2049_v33, %v1678_v8  ;;  %v1235_v54 = vadd.f32 %v1234_v56, %v3561_v49  ;;  %v1236_v9 = vpop.f32.mrb[71].mxu0  ;;  %2275 = vadd.xlane.f32.xlu0 %v2112_v11  ;;  %v1492_v6 = vadd.f32 %v1491_v10, %v3561_v49  ;;  %v1493_v46 = vpop.f32.mrb[71].mxu1 }
 0x182   : > { %v1237_v12 = vadd.f32 %v1236_v9, %v3561_v49  ;;  %v1494_v31 = vadd.f32 %v1493_v46, %v3561_v49 }
 0x183   : > { %v2050_v58 = vadd.f32 %v2018_v62, %v1685_v47  ;;  %v1692_v14 = vmax.f32 %v1235_v54, 0.0  ;;  %v2113_v32 = vadd.f32 %v2081_v44, %v1679_v63  ;;  %v1694_v22 = vmax.f32 %v1492_v6, 0.0 }
 0x184   : > { %v1693_v17 = vmax.f32 %v1237_v12, 0.0  ;;  %v1240_v4 = vpop.f32.mrb[72].mxu0  ;;  %v1497_v25 = vpop.f32.mrb[72].mxu1  ;;  %v1695_v62 = vmax.f32 %v1494_v31, 0.0 }
 0x185   : > { %v2019_v8 = vadd.f32 %v3598_v40, %v1692_v14  ;;  %v2082_v21 = vadd.f32 %v2050_v58, %v1686_v34  ;;  %v1241_v35 = vadd.f32 %v1240_v4, %v3575_v2  ;;  %v1242_v33 = vpop.f32.mrb[73].mxu0  ;;  %2277 = vadd.xlane.f32.xlu1 %v2113_v32  ;;  %v1498_v48 = vadd.f32 %v1497_v25, %v3575_v2  ;;  %v1499_v11 = vpop.f32.mrb[73].mxu1 }
 0x186   : > { %v1243_v47 = vadd.f32 %v1242_v33, %v3575_v2  ;;  %v1500_v54 = vadd.f32 %v1499_v11, %v3575_v2 }
 0x187   : > { %v2051_v63 = vadd.f32 %v2019_v8, %v1693_v17  ;;  %v1700_v56 = vmax.f32 %v1241_v35, 0.0  ;;  %v2114_v19 = vadd.f32 %v2082_v21, %v1687_v7  ;;  %v1702_v49 = vmax.f32 %v1498_v48, 0.0 }
 0x188   : > { %v1701_v10 = vmax.f32 %v1243_v47, 0.0  ;;  %v1246_v44 = vpop.f32.mrb[74].mxu0  ;;  %v1503_v40 = vpop.f32.mrb[74].mxu1  ;;  %v1703_v31 = vmax.f32 %v1500_v54, 0.0 }
 0x189   : > { %v2020_v34 = vadd.f32 %v3612_v57, %v1700_v56  ;;  %v2083_v9 = vadd.f32 %v2051_v63, %v1694_v22  ;;  %v1247_v6 = vadd.f32 %v1246_v44, %v3589_v28  ;;  %v1248_v46 = vpop.f32.mrb[75].mxu0  ;;  %2279 = vadd.xlane.f32.xlu0 %v2114_v19  ;;  %v1504_v12 = vadd.f32 %v1503_v40, %v3589_v28  ;;  %v1505_v58 = vpop.f32.mrb[75].mxu1 }
 0x18a   : > { %v1249_v14 = vadd.f32 %v1248_v46, %v3589_v28  ;;  %v1506_v8 = vadd.f32 %v1505_v58, %v3589_v28 }
 0x18b   : > { %v2052_v32 = vadd.f32 %v2020_v34, %v1701_v10  ;;  %v1708_v17 = vmax.f32 %v1247_v6, 0.0  ;;  %v2115_v7 = vadd.f32 %v2083_v9, %v1695_v62  ;;  %v1710_v2 = vmax.f32 %v1504_v12, 0.0 }
 0x18c   : > { %v1709_v4 = vmax.f32 %v1249_v14, 0.0  ;;  %v1252_v25 = vpop.f32.mrb[76].mxu0  ;;  %v1509_v57 = vpop.f32.mrb[76].mxu1  ;;  %v1711_v62 = vmax.f32 %v1506_v8, 0.0 }
 0x18d   : > { %v2021_v22 = vadd.f32 %v3626_v20, %v1708_v17  ;;  %v2084_v21 = vadd.f32 %v2052_v32, %v1702_v49  ;;  %v1253_v35 = vadd.f32 %v1252_v25, %v3603_v43  ;;  %v1254_v33 = vpop.f32.mrb[77].mxu0  ;;  %2281 = vadd.xlane.f32.xlu0 %v2115_v7  ;;  %v1510_v48 = vadd.f32 %v1509_v57, %v3603_v43  ;;  %v1511_v11 = vpop.f32.mrb[77].mxu1 }
 0x18e   : > { %v1255_v47 = vadd.f32 %v1254_v33, %v3603_v43  ;;  %v1512_v54 = vadd.f32 %v1511_v11, %v3603_v43 }
 0x18f   : > { %v2053_v63 = vadd.f32 %v2021_v22, %v1709_v4  ;;  %v1716_v56 = vmax.f32 %v1253_v35, 0.0  ;;  %v2116_v19 = vadd.f32 %v2084_v21, %v1703_v31  ;;  %v1718_v28 = vmax.f32 %v1510_v48, 0.0 }
 0x190   : > { %v1717_v10 = vmax.f32 %v1255_v47, 0.0  ;;  %v1258_v44 = vpop.f32.mrb[78].mxu0  ;;  %v1515_v20 = vpop.f32.mrb[78].mxu1  ;;  %v1719_v7 = vmax.f32 %v1512_v54, 0.0 }
 0x191   : > { %v2022_v49 = vadd.f32 %v3640_v37, %v1716_v56  ;;  %v2085_v40 = vadd.f32 %v2053_v63, %v1710_v2  ;;  %v1259_v34 = vadd.f32 %v1258_v44, %v3617_v60  ;;  %v1260_v9 = vpop.f32.mrb[79].mxu0  ;;  %2283 = vadd.xlane.f32.xlu1 %v2116_v19  ;;  %v1516_v6 = vadd.f32 %v1515_v20, %v3617_v60  ;;  %v1517_v46 = vpop.f32.mrb[79].mxu1 }
 0x192   : > { %v1261_v12 = vadd.f32 %v1260_v9, %v3617_v60  ;;  %v1518_v31 = vadd.f32 %v1517_v46, %v3617_v60 }
 0x193   : > { %v2054_v58 = vadd.f32 %v2022_v49, %v1717_v10  ;;  %v1724_v14 = vmax.f32 %v1259_v34, 0.0  ;;  %v2117_v32 = vadd.f32 %v2085_v40, %v1711_v62  ;;  %v1726_v43 = vmax.f32 %v1516_v6, 0.0 }
 0x194   : > { %v1725_v17 = vmax.f32 %v1261_v12, 0.0  ;;  %v1264_v4 = vpop.f32.mrb[80].mxu0  ;;  %v1521_v37 = vpop.f32.mrb[80].mxu1  ;;  %v1727_v63 = vmax.f32 %v1518_v31, 0.0 }
 0x195   : > { %v2023_v25 = vadd.f32 %v3654_v55, %v1724_v14  ;;  %v2086_v2 = vadd.f32 %v2054_v58, %v1718_v28  ;;  %v1265_v8 = vadd.f32 %v1264_v4, %v3631_v24  ;;  %v1266_v57 = vpop.f32.mrb[81].mxu0  ;;  %2285 = vadd.xlane.f32.xlu0 %v2117_v32  ;;  %v1522_v22 = vadd.f32 %v1521_v37, %v3631_v24  ;;  %v1523_v21 = vpop.f32.mrb[81].mxu1 }
 0x196   : > { %v1267_v35 = vadd.f32 %v1266_v57, %v3631_v24  ;;  %v1524_v19 = vadd.f32 %v1523_v21, %v3631_v24 }
 0x197   : > { %v2055_v33 = vadd.f32 %v2023_v25, %v1725_v17  ;;  %v1732_v48 = vmax.f32 %v1265_v8, 0.0  ;;  %v2118_v11 = vadd.f32 %v2086_v2, %v1719_v7  ;;  %v1734_v60 = vmax.f32 %v1522_v22, 0.0 }
 0x198   : > { %v1733_v47 = vmax.f32 %v1267_v35, 0.0  ;;  %v1270_v56 = vpop.f32.mrb[82].mxu0  ;;  %v1527_v55 = vpop.f32.mrb[82].mxu1  ;;  %v1735_v46 = vmax.f32 %v1524_v19, 0.0 }
 0x199   : > { %v2024_v10 = vadd.f32 %v3668_v18, %v1732_v48  ;;  %v2087_v62 = vadd.f32 %v2055_v33, %v1726_v43  ;;  %v1271_v44 = vadd.f32 %v1270_v56, %v3645_v41  ;;  %v1272_v28 = vpop.f32.mrb[83].mxu0  ;;  %2287 = vadd.xlane.f32.xlu1 %v2118_v11  ;;  %v1528_v54 = vadd.f32 %v1527_v55, %v3645_v41  ;;  %v1529_v20 = vpop.f32.mrb[83].mxu1 }
 0x19a   : > { %v1273_v49 = vadd.f32 %v1272_v28, %v3645_v41  ;;  %v1530_v58 = vadd.f32 %v1529_v20, %v3645_v41 }
 0x19b   : > { %v2056_v40 = vadd.f32 %v2024_v10, %v1733_v47  ;;  %v1740_v34 = vmax.f32 %v1271_v44, 0.0  ;;  %v2119_v9 = vadd.f32 %v2087_v62, %v1727_v63  ;;  %v1742_v24 = vmax.f32 %v1528_v54, 0.0 }
 0x19c   : > { %v1741_v6 = vmax.f32 %v1273_v49, 0.0  ;;  %v1276_v12 = vpop.f32.mrb[84].mxu0  ;;  %v1533_v18 = vpop.f32.mrb[84].mxu1  ;;  %v1743_v57 = vmax.f32 %v1530_v58, 0.0 }
 0x19d   : > { %v2025_v14 = vadd.f32 %v3676_v38, %v1740_v34  ;;  %v2088_v32 = vadd.f32 %v2056_v40, %v1734_v60  ;;  %v1277_v17 = vadd.f32 %v1276_v12, %v3659_v59  ;;  %v1278_v7 = vpop.f32.mrb[85].mxu0  ;;  %2289 = vadd.xlane.f32.xlu0 %v2119_v9  ;;  %v1534_v4 = vadd.f32 %v1533_v18, %v3659_v59  ;;  %v1535_v43 = vpop.f32.mrb[85].mxu1 }
 0x19e   : > { %v1279_v31 = vadd.f32 %v1278_v7, %v3659_v59  ;;  %v1536_v21 = vadd.f32 %v1535_v43, %v3659_v59 }
 0x19f   : > { %v2057_v37 = vadd.f32 %v2025_v14, %v1741_v6  ;;  %v1748_v25 = vmax.f32 %v1277_v17, 0.0  ;;  %v2120_v2 = vadd.f32 %v2088_v32, %v1735_v46  ;;  %v1750_v41 = vmax.f32 %v1534_v4, 0.0 }
 0x1a0   : > { %v1749_v8 = vmax.f32 %v1279_v31, 0.0  ;;  %v1282_v22 = vpop.f32.mrb[86].mxu0  ;;  %v1539_v38 = vpop.f32.mrb[86].mxu1  ;;  %v1751_v62 = vmax.f32 %v1536_v21, 0.0 }
 0x1a1   : > { %v2026_v35 = vadd.f32 %v3684_v61, %v1748_v25  ;;  %v2089_v33 = vadd.f32 %v2057_v37, %v1742_v24  ;;  %v1283_v48 = vadd.f32 %v1282_v22, %v3671_v23  ;;  %v1284_v11 = vpop.f32.mrb[87].mxu0  ;;  %2291 = vadd.xlane.f32.xlu1 %v2120_v2  ;;  %v1540_v47 = vadd.f32 %v1539_v38, %v3671_v23  ;;  %v1541_v63 = vpop.f32.mrb[87].mxu1 }
 0x1a2   : > { %v1285_v56 = vadd.f32 %v1284_v11, %v3671_v23  ;;  %v1542_v28 = vadd.f32 %v1541_v63, %v3671_v23 }
 0x1a3   : > { %v2058_v60 = vadd.f32 %v2026_v35, %v1749_v8  ;;  %v1756_v19 = vmax.f32 %v1283_v48, 0.0  ;;  %v2121_v55 = vadd.f32 %v2089_v33, %v1743_v57  ;;  %v1758_v59 = vmax.f32 %v1540_v47, 0.0 }
 0x1a4   : > { %v1757_v10 = vmax.f32 %v1285_v56, 0.0  ;;  %v1288_v44 = vpop.f32.mrb[88].mxu0  ;;  %v1545_v61 = vpop.f32.mrb[88].mxu1  ;;  %v1759_v18 = vmax.f32 %v1542_v28, 0.0 }
 0x1a5   : > { %v2027_v54 = vadd.f32 %v3692_v29, %v1756_v19  ;;  %v2090_v20 = vadd.f32 %v2058_v60, %v1750_v41  ;;  %v1289_v49 = vadd.f32 %v1288_v44, %v3679_v42  ;;  %v1290_v40 = vpop.f32.mrb[89].mxu0  ;;  %2293 = vadd.xlane.f32.xlu0 %v2121_v55  ;;  %v1546_v34 = vadd.f32 %v1545_v61, %v3679_v42  ;;  %v1547_v9 = vpop.f32.mrb[89].mxu1 }
 0x1a6   : > { %v1291_v6 = vadd.f32 %v1290_v40, %v3679_v42  ;;  %v1548_v32 = vadd.f32 %v1547_v9, %v3679_v42 }
 0x1a7   : > { %v2059_v46 = vadd.f32 %v2027_v54, %v1757_v10  ;;  %v1764_v12 = vmax.f32 %v1289_v49, 0.0  ;;  %v2122_v24 = vadd.f32 %v2090_v20, %v1751_v62  ;;  %v1766_v23 = vmax.f32 %v1546_v34, 0.0 }
 0x1a8   : > { %v1765_v58 = vmax.f32 %v1291_v6, 0.0  ;;  %v1294_v14 = vpop.f32.mrb[90].mxu0  ;;  %v1551_v29 = vpop.f32.mrb[90].mxu1  ;;  %v1767_v41 = vmax.f32 %v1548_v32, 0.0 }
 0x1a9   : > { %v2028_v17 = vadd.f32 %v3700_v5, %v1764_v12  ;;  %v2091_v7 = vadd.f32 %v2059_v46, %v1758_v59  ;;  %v1295_v4 = vadd.f32 %v1294_v14, %v3687_v1  ;;  %v1296_v43 = vpop.f32.mrb[91].mxu0  ;;  %2295 = vadd.xlane.f32.xlu1 %v2122_v24  ;;  %v1552_v31 = vadd.f32 %v1551_v29, %v3687_v1  ;;  %v1553_v37 = vpop.f32.mrb[91].mxu1 }
 0x1aa   : > { %v1297_v25 = vadd.f32 %v1296_v43, %v3687_v1  ;;  %v1554_v42 = vadd.f32 %v1553_v37, %v3687_v1 }
 0x1ab   : > { %v2060_v2 = vadd.f32 %v2028_v17, %v1765_v58  ;;  %v1772_v8 = vmax.f32 %v1295_v4, 0.0  ;;  %v2123_v57 = vadd.f32 %v2091_v7, %v1759_v18  ;;  %v1774_v33 = vmax.f32 %v1552_v31, 0.0 }
 0x1ac   : > { %v1773_v22 = vmax.f32 %v1297_v25, 0.0  ;;  %v1300_v21 = vpop.f32.mrb[92].mxu0  ;;  %v1557_v38 = vpop.f32.mrb[92].mxu1  ;;  %v1775_v10 = vmax.f32 %v1554_v42, 0.0 }
 0x1ad   : > { %v2029_v5 = vadd.f32 %v3708_v15, %v1772_v8  ;;  %v2092_v35 = vadd.f32 %v2060_v2, %v1766_v23  ;;  %v1301_v48 = vadd.f32 %v1300_v21, %v3695_v30  ;;  %v1302_v11 = vpop.f32.mrb[93].mxu0  ;;  %v1559_v47 = vpop.f32.mrb[93].mxu1  ;;  %2297 = vadd.xlane.f32.xlu0 %v2123_v57  ;;  %v1558_v63 = vadd.f32 %v1557_v38, %v3695_v30 }
 0x1ae   : > { %v1303_v56 = vadd.f32 %v1302_v11, %v3695_v30  ;;  %v1560_v28 = vadd.f32 %v1559_v47, %v3695_v30 }
 0x1af   : > { %v2061_v60 = vadd.f32 %v2029_v5, %v1773_v22  ;;  %v1780_v19 = vmax.f32 %v1301_v48, 0.0  ;;  %v2124_v55 = vadd.f32 %v2092_v35, %v1767_v41  ;;  %v1782_v49 = vmax.f32 %v1558_v63, 0.0 }
 0x1b0   : > { %v1781_v1 = vmax.f32 %v1303_v56, 0.0  ;;  %v1306_v62 = vpop.f32.mrb[94].mxu0  ;;  %v1563_v44 = vpop.f32.mrb[94].mxu1  ;;  %v1783_v18 = vmax.f32 %v1560_v28, 0.0 }
 0x1b1   : > { %v2093_v59 = vadd.f32 %v2061_v60, %v1774_v33  ;;  %v2030_v15 = vadd.f32 %v3716_v39, %v1780_v19  ;;  %v1307_v61 = vadd.f32 %v1306_v62, %v3703_v50  ;;  %v1308_v54 = vpop.f32.mrb[95].mxu0  ;;  %v1565_v20 = vpop.f32.mrb[95].mxu1  ;;  %2299 = vadd.xlane.f32.xlu1 %v2124_v55  ;;  %v1564_v6 = vadd.f32 %v1563_v44, %v3703_v50 }
 0x1b2   : > { %v1309_v40 = vadd.f32 %v1308_v54, %v3703_v50  ;;  %v1566_v24 = vadd.f32 %v1565_v20, %v3703_v50 }
 0x1b3   : > { %v2062_v34 = vadd.f32 %v2030_v15, %v1781_v1  ;;  %v1788_v9 = vmax.f32 %v1307_v61, 0.0  ;;  %v2125_v46 = vadd.f32 %v2093_v59, %v1775_v10  ;;  %v1790_v4 = vmax.f32 %v1564_v6, 0.0 }
 0x1b4   : > { %v1789_v12 = vmax.f32 %v1309_v40, 0.0  ;;  %v1312_v58 = vpop.f32.mrb[96].mxu0  ;;  %v1569_v39 = vpop.f32.mrb[96].mxu1  ;;  %v1791_v50 = vmax.f32 %v1566_v24, 0.0 }
 0x1b5   : > { %v2031_v30 = vadd.f32 %v3724_v13, %v1788_v9  ;;  %v1313_v14 = vadd.f32 %v1312_v58, %v3711_v16  ;;  %v1314_v23 = vpop.f32.mrb[97].mxu0  ;;  %v1571_v32 = vpop.f32.mrb[97].mxu1  ;;  %2301 = vadd.xlane.f32.xlu0 %v2125_v46  ;;  %v2094_v29 = vadd.f32 %v2062_v34, %v1782_v49  ;;  %v1570_v17 = vadd.f32 %v1569_v39, %v3711_v16  ;;  %v4209_v34 = vld [vmem:[#allocation6_spill] sm:$0xff] }
 0x1b6   : > { %v1315_v7 = vadd.f32 %v1314_v23, %v3711_v16  ;;  %v1572_v57 = vadd.f32 %v1571_v32, %v3711_v16 }
 0x1b7   : > { %v2063_v43 = vadd.f32 %v2031_v30, %v1789_v12  ;;  %v1796_v31 = vmax.f32 %v1313_v14, 0.0  ;;  %v2126_v37 = vadd.f32 %v2094_v29, %v1783_v18  ;;  %v1798_v38 = vmax.f32 %v1570_v17, 0.0  ;;  %v4210_v17 = vld [vmem:[#allocation9_spill] sm:$0xff] }
 0x1b8   : > { %v1797_v25 = vmax.f32 %v1315_v7, 0.0  ;;  %v1318_v2 = vpop.f32.mrb[98].mxu0  ;;  %v1575_v8 = vpop.f32.mrb[98].mxu1  ;;  %v1799_v16 = vmax.f32 %v1572_v57, 0.0 }
 0x1b9   : > { %v2032_v13 = vadd.f32 %v3732_v36, %v1796_v31  ;;  %v1319_v22 = vadd.f32 %v1318_v2, %v3719_v45  ;;  %v1320_v41 = vpop.f32.mrb[99].mxu0  ;;  %v1577_v42 = vpop.f32.mrb[99].mxu1  ;;  %2303 = vadd.xlane.f32.xlu1 %v2126_v37  ;;  %v2095_v21 = vadd.f32 %v2063_v43, %v1790_v4  ;;  %v1576_v48 = vadd.f32 %v1575_v8, %v3719_v45  ;;  %v4211_v4 = vld [vmem:[#allocation7_spill] sm:$0xff] }
 0x1ba   : > { %v1321_v5 = vadd.f32 %v1320_v41, %v3719_v45  ;;  %v1578_v63 = vadd.f32 %v1577_v42, %v3719_v45 }
 0x1bb   : > { %v2064_v35 = vadd.f32 %v2032_v13, %v1797_v25  ;;  %v1804_v33 = vmax.f32 %v1319_v22, 0.0  ;;  %v2127_v11 = vadd.f32 %v2095_v21, %v1791_v50  ;;  %v1806_v59 = vmax.f32 %v1576_v48, 0.0  ;;  %v4213_v48 = vld [vmem:[#allocation8_spill] sm:$0xff] }
 0x1bc   : > { %v1805_v47 = vmax.f32 %v1321_v5, 0.0  ;;  %v1324_v36 = vpop.f32.mrb[100].mxu0  ;;  %v1581_v56 = vpop.f32.mrb[100].mxu1  ;;  %v1807_v45 = vmax.f32 %v1578_v63, 0.0  ;;  %v4212_v5 = vld [vmem:[#allocation11_spill] sm:$0xff] }
 0x1bd   : > { %v2033_v60 = vadd.f32 %v3740_v0, %v1804_v33  ;;  %v1325_v19 = vadd.f32 %v1324_v36, %v3727_v3  ;;  %v1326_v55 = vpop.f32.mrb[101].mxu0  ;;  %v1583_v10 = vpop.f32.mrb[101].mxu1  ;;  %2305 = vadd.xlane.f32.xlu0 %v2127_v11  ;;  %v2096_v1 = vadd.f32 %v2064_v35, %v1798_v38  ;;  %v1582_v62 = vadd.f32 %v1581_v56, %v3727_v3 }
 0x1be   : > { %v1327_v44 = vadd.f32 %v1326_v55, %v3727_v3  ;;  %v1584_v40 = vadd.f32 %v1583_v10, %v3727_v3 }
 0x1bf   : > { %v2065_v15 = vadd.f32 %v2033_v60, %v1805_v47  ;;  %v1812_v28 = vmax.f32 %v1325_v19, 0.0  ;;  %v2128_v61 = vadd.f32 %v2096_v1, %v1799_v16  ;;  %v1814_v24 = vmax.f32 %v1582_v62, 0.0 }
 0x1c0   : > { %v1813_v54 = vmax.f32 %v1327_v44, 0.0  ;;  %v1330_v20 = vpop.f32.mrb[102].mxu0  ;;  %v1587_v49 = vpop.f32.mrb[102].mxu1  ;;  %v1815_v3 = vmax.f32 %v1584_v40, 0.0 }
 0x1c1   : > { %v2034_v0 = vadd.f32 %v3748_v51, %v1812_v28  ;;  %v1331_v9 = vadd.f32 %v1330_v20, %v4209_v34  ;;  %v1332_v6 = vpop.f32.mrb[103].mxu0  ;;  %v1589_v46 = vpop.f32.mrb[103].mxu1  ;;  %2307 = vadd.xlane.f32.xlu1 %v2128_v61  ;;  %v2097_v12 = vadd.f32 %v2065_v15, %v1806_v59  ;;  %v1588_v30 = vadd.f32 %v1587_v49, %v4209_v34  ;;  %v4214_v28 = vld [vmem:[#allocation13_spill] sm:$0xff] }
 0x1c2   : > { %v1333_v58 = vadd.f32 %v1332_v6, %v4209_v34  ;;  %v1590_v32 = vadd.f32 %v1589_v46, %v4209_v34 }
 0x1c3   : > { %v2066_v39 = vadd.f32 %v2034_v0, %v1813_v54  ;;  %v1820_v18 = vmax.f32 %v1331_v9, 0.0  ;;  %v2129_v14 = vadd.f32 %v2097_v12, %v1807_v45  ;;  %v1822_v8 = vmax.f32 %v1588_v30, 0.0  ;;  %v4215_v45 = vld [vmem:[#allocation10_spill] sm:$0xff]  ;;  %v4216_v30 = vld [vmem:[#allocation15_spill] sm:$0xff] }
 0x1c4   : > { %v1821_v23 = vmax.f32 %v1333_v58, 0.0  ;;  %v1336_v51 = vpop.f32.mrb[104].mxu0  ;;  %v1593_v29 = vpop.f32.mrb[104].mxu1  ;;  %v1823_v41 = vmax.f32 %v1590_v32, 0.0  ;;  %v4217_v32 = vld [vmem:[#allocation12_spill] sm:$0xff] }
 0x1c5   : > { %v2035_v7 = vadd.f32 %v4210_v17, %v1820_v18  ;;  %v1337_v43 = vadd.f32 %v1336_v51, %v4211_v4  ;;  %v1338_v31 = vpop.f32.mrb[105].mxu0  ;;  %v1595_v37 = vpop.f32.mrb[105].mxu1  ;;  %2309 = vadd.xlane.f32.xlu0 %v2129_v14  ;;  %v2098_v50 = vadd.f32 %v2066_v39, %v1814_v24  ;;  %v1594_v25 = vadd.f32 %v1593_v29, %v4211_v4 }
 0x1c6   : > { %v1339_v2 = vadd.f32 %v1338_v31, %v4211_v4  ;;  %v1596_v33 = vadd.f32 %v1595_v37, %v4211_v4 }
 0x1c7   : > { %v2067_v13 = vadd.f32 %v2035_v7, %v1821_v23  ;;  %v1828_v57 = vmax.f32 %v1337_v43, 0.0  ;;  %v2130_v22 = vadd.f32 %v2098_v50, %v1815_v3  ;;  %v1830_v56 = vmax.f32 %v1594_v25, 0.0 }
 0x1c8   : > { %v1829_v42 = vmax.f32 %v1339_v2, 0.0  ;;  %v1342_v21 = vpop.f32.mrb[106].mxu0  ;;  %v1599_v38 = vpop.f32.mrb[106].mxu1  ;;  %v1831_v15 = vmax.f32 %v1596_v33, 0.0 }
 0x1c9   : > { %v2036_v35 = vadd.f32 %v4212_v5, %v1828_v57  ;;  %v1343_v11 = vadd.f32 %v1342_v21, %v4213_v48  ;;  %v1344_v47 = vpop.f32.mrb[107].mxu0  ;;  %v1601_v63 = vpop.f32.mrb[107].mxu1  ;;  %2311 = vadd.xlane.f32.xlu1 %v2130_v22  ;;  %v2099_v36 = vadd.f32 %v2067_v13, %v1822_v8  ;;  %v1600_v55 = vadd.f32 %v1599_v38, %v4213_v48  ;;  %v4218_v22 = vld [vmem:[#allocation17_spill] sm:$0xff] }
 0x1ca   : > { %v1345_v16 = vadd.f32 %v1344_v47, %v4213_v48  ;;  %v1602_v62 = vadd.f32 %v1601_v63, %v4213_v48 }
 0x1cb   : > { %v2068_v60 = vadd.f32 %v2036_v35, %v1829_v42  ;;  %v1836_v19 = vmax.f32 %v1343_v11, 0.0  ;;  %v2131_v10 = vadd.f32 %v2099_v36, %v1823_v41  ;;  %v1838_v9 = vmax.f32 %v1600_v55, 0.0  ;;  %v4219_v42 = vld [vmem:[#allocation14_spill] sm:$0xff]  ;;  %v4220_v55 = vld [vmem:[#allocation19_spill] sm:$0xff] }
 0x1cc   : > { %v1837_v1 = vmax.f32 %v1345_v16, 0.0  ;;  %v1348_v44 = vpop.f32.mrb[108].mxu0  ;;  %v1605_v59 = vpop.f32.mrb[108].mxu1  ;;  %v1839_v24 = vmax.f32 %v1602_v62, 0.0  ;;  %v4221_v62 = vld [vmem:[#allocation16_spill] sm:$0xff] }
 0x1cd   : > { %v2037_v61 = vadd.f32 %v4214_v28, %v1836_v19  ;;  %v1349_v54 = vadd.f32 %v1348_v44, %v4215_v45  ;;  %v1350_v20 = vpop.f32.mrb[109].mxu0  ;;  %v1607_v49 = vpop.f32.mrb[109].mxu1  ;;  %2313 = vadd.xlane.f32.xlu0 %v2131_v10  ;;  %v2100_v0 = vadd.f32 %v2068_v60, %v1830_v56  ;;  %v1606_v40 = vadd.f32 %v1605_v59, %v4215_v45 }
 0x1ce   : > { %v1351_v34 = vadd.f32 %v1350_v20, %v4215_v45  ;;  %v1608_v23 = vadd.f32 %v1607_v49, %v4215_v45 }
 0x1cf   : > { %v2069_v6 = vadd.f32 %v2037_v61, %v1837_v1  ;;  %v1844_v46 = vmax.f32 %v1349_v54, 0.0  ;;  %v2132_v12 = vadd.f32 %v2100_v0, %v1831_v15  ;;  %v1846_v7 = vmax.f32 %v1606_v40, 0.0 }
 0x1d0   : > { %v1845_v58 = vmax.f32 %v1351_v34, 0.0  ;;  %v1354_v39 = vpop.f32.mrb[110].mxu0  ;;  %v1611_v18 = vpop.f32.mrb[110].mxu1  ;;  %v1847_v57 = vmax.f32 %v1608_v23, 0.0 }
 0x1d1   : > { %v2038_v14 = vadd.f32 %v4216_v30, %v1844_v46  ;;  %v1355_v51 = vadd.f32 %v1354_v39, %v4217_v32  ;;  %v1356_v29 = vpop.f32.mrb[111].mxu0  ;;  %v1613_v3 = vpop.f32.mrb[111].mxu1  ;;  %2315 = vadd.xlane.f32.xlu1 %v2132_v12  ;;  %v2101_v17 = vadd.f32 %v2069_v6, %v1838_v9  ;;  %v1612_v37 = vadd.f32 %v1611_v18, %v4217_v32  ;;  %v4222_v12 = vld [vmem:[#allocation21_spill] sm:$0xff] }
 0x1d2   : > { %v1357_v4 = vadd.f32 %v1356_v29, %v4217_v32  ;;  %v1614_v2 = vadd.f32 %v1613_v3, %v4217_v32 }
 0x1d3   : > { %v2070_v43 = vadd.f32 %v2038_v14, %v1845_v58  ;;  %v1852_v31 = vmax.f32 %v1355_v51, 0.0  ;;  %v2133_v50 = vadd.f32 %v2101_v17, %v1839_v24  ;;  %v1854_v11 = vmax.f32 %v1612_v37, 0.0  ;;  %v4223_v58 = vld [vmem:[#allocation18_spill] sm:$0xff]  ;;  %v4224_v37 = vld [vmem:[#allocation23_spill] sm:$0xff] }
 0x1d4   : > { %v1853_v25 = vmax.f32 %v1357_v4, 0.0  ;;  %v1360_v8 = vpop.f32.mrb[112].mxu0  ;;  %v1617_v13 = vpop.f32.mrb[112].mxu1  ;;  %v1855_v56 = vmax.f32 %v1614_v2, 0.0  ;;  %v4225_v2 = vld [vmem:[#allocation20_spill] sm:$0xff] }
 0x1d5   : > { %v2039_v41 = vadd.f32 %v4218_v22, %v1852_v31  ;;  %v1361_v21 = vadd.f32 %v1360_v8, %v4219_v42  ;;  %v1362_v38 = vpop.f32.mrb[113].mxu0  ;;  %v1619_v5 = vpop.f32.mrb[113].mxu1  ;;  %2317 = vadd.xlane.f32.xlu0 %v2133_v50  ;;  %v2102_v35 = vadd.f32 %v2070_v43, %v1846_v7  ;;  %v1618_v33 = vadd.f32 %v1617_v13, %v4219_v42 }
 0x1d6   : > { %v1363_v48 = vadd.f32 %v1362_v38, %v4219_v42  ;;  %v1620_v1 = vadd.f32 %v1619_v5, %v4219_v42 }
 0x1d7   : > { %v2071_v47 = vadd.f32 %v2039_v41, %v1853_v25  ;;  %v1860_v63 = vmax.f32 %v1361_v21, 0.0  ;;  %v2134_v36 = vadd.f32 %v2102_v35, %v1847_v57  ;;  %v1862_v61 = vmax.f32 %v1618_v33, 0.0 }
 0x1d8   : > { %v1861_v16 = vmax.f32 %v1363_v48, 0.0  ;;  %v1366_v60 = vpop.f32.mrb[114].mxu0  ;;  %v1623_v19 = vpop.f32.mrb[114].mxu1  ;;  %v1863_v46 = vmax.f32 %v1620_v1, 0.0 }
 0x1d9   : > { %v2040_v10 = vadd.f32 %v4220_v55, %v1860_v63  ;;  %v1367_v44 = vadd.f32 %v1366_v60, %v4221_v62  ;;  %v1368_v59 = vpop.f32.mrb[115].mxu0  ;;  %v1625_v15 = vpop.f32.mrb[115].mxu1  ;;  %2319 = vadd.xlane.f32.xlu1 %v2134_v36  ;;  %v2103_v28 = vadd.f32 %v2071_v47, %v1854_v11  ;;  %v1624_v49 = vadd.f32 %v1623_v19, %v4221_v62  ;;  %v4226_v36 = vld [vmem:[#allocation25_spill] sm:$0xff] }
 0x1da   : > { %v1369_v45 = vadd.f32 %v1368_v59, %v4221_v62  ;;  %v1626_v34 = vadd.f32 %v1625_v15, %v4221_v62 }
 0x1db   : > { %v2072_v54 = vadd.f32 %v2040_v10, %v1861_v16  ;;  %v1868_v20 = vmax.f32 %v1367_v44, 0.0  ;;  %v2135_v0 = vadd.f32 %v2103_v28, %v1855_v56  ;;  %v1870_v51 = vmax.f32 %v1624_v49, 0.0  ;;  %v4227_v16 = vld [vmem:[#allocation22_spill] sm:$0xff]  ;;  %v4228_v49 = vld [vmem:[#allocation27_spill] sm:$0xff] }
 0x1dc   : > { %v1869_v40 = vmax.f32 %v1369_v45, 0.0  ;;  %v1372_v9 = vpop.f32.mrb[116].mxu0  ;;  %v1629_v6 = vpop.f32.mrb[116].mxu1  ;;  %v1871_v7 = vmax.f32 %v1626_v34, 0.0  ;;  %v4229_v34 = vld [vmem:[#allocation24_spill] sm:$0xff] }
 0x1dd   : > { %v2041_v24 = vadd.f32 %v4222_v12, %v1868_v20  ;;  %v1373_v39 = vadd.f32 %v1372_v9, %v4223_v58  ;;  %v1374_v18 = vpop.f32.mrb[117].mxu0  ;;  %v1631_v30 = vpop.f32.mrb[117].mxu1  ;;  %2321 = vadd.xlane.f32.xlu0 %v2135_v0  ;;  %v2104_v14 = vadd.f32 %v2072_v54, %v1862_v61  ;;  %v1630_v23 = vadd.f32 %v1629_v6, %v4223_v58 }
 0x1de   : > { %v1375_v32 = vadd.f32 %v1374_v18, %v4223_v58  ;;  %v1632_v25 = vadd.f32 %v1631_v30, %v4223_v58 }
 0x1df   : > { %v2073_v29 = vadd.f32 %v2041_v24, %v1869_v40  ;;  %v1876_v3 = vmax.f32 %v1373_v39, 0.0  ;;  %v2136_v17 = vadd.f32 %v2104_v14, %v1863_v46  ;;  %v1878_v41 = vmax.f32 %v1630_v23, 0.0 }
 0x1e0   : > { %v1877_v4 = vmax.f32 %v1375_v32, 0.0  ;;  %v1378_v43 = vpop.f32.mrb[118].mxu0  ;;  %v1635_v31 = vpop.f32.mrb[118].mxu1  ;;  %v1879_v63 = vmax.f32 %v1632_v25, 0.0 }
 0x1e1   : > { %v2042_v50 = vadd.f32 %v4224_v37, %v1876_v3  ;;  %v1379_v8 = vadd.f32 %v1378_v43, %v4225_v2  ;;  %v1380_v13 = vpop.f32.mrb[119].mxu0  ;;  %v1637_v57 = vpop.f32.mrb[119].mxu1  ;;  %2323 = vadd.xlane.f32.xlu1 %v2136_v17  ;;  %v2105_v22 = vadd.f32 %v2073_v29, %v1870_v51  ;;  %v1636_v5 = vadd.f32 %v1635_v31, %v4225_v2 }
 0x1e2   : > { %v1381_v42 = vadd.f32 %v1380_v13, %v4225_v2  ;;  %v1638_v48 = vadd.f32 %v1637_v57, %v4225_v2 }
 0x1e3   : > { %v2074_v21 = vadd.f32 %v2042_v50, %v1877_v4  ;;  %v1884_v38 = vmax.f32 %v1379_v8, 0.0  ;;  %v2137_v35 = vadd.f32 %v2105_v22, %v1871_v7  ;;  %v1886_v44 = vmax.f32 %v1636_v5, 0.0  ;;  %v4230_v7 = vld [vmem:[#allocation26_spill] sm:$0xff] }
 0x1e4   : > { %v1885_v33 = vmax.f32 %v1381_v42, 0.0  ;;  %v1384_v11 = vpop.f32.mrb[120].mxu0  ;;  %v1641_v47 = vpop.f32.mrb[120].mxu1  ;;  %v1887_v61 = vmax.f32 %v1638_v48, 0.0 }
 0x1e5   : > { %v2043_v56 = vadd.f32 %v4226_v36, %v1884_v38  ;;  %v1385_v60 = vadd.f32 %v1384_v11, %v4227_v16  ;;  %v1386_v19 = vpop.f32.mrb[121].mxu0  ;;  %v1643_v55 = vpop.f32.mrb[121].mxu1  ;;  %2325 = vadd.xlane.f32.xlu0 %v2137_v35  ;;  %v2106_v10 = vadd.f32 %v2074_v21, %v1878_v41  ;;  %v1642_v1 = vadd.f32 %v1641_v47, %v4227_v16 }
 0x1e6   : > { %v1387_v62 = vadd.f32 %v1386_v19, %v4227_v16  ;;  %v1644_v40 = vadd.f32 %v1643_v55, %v4227_v16 }
 0x1e7   : > { %v2075_v59 = vadd.f32 %v2043_v56, %v1885_v33  ;;  %v1892_v15 = vmax.f32 %v1385_v60, 0.0  ;;  %v2138_v28 = vadd.f32 %v2106_v10, %v1879_v63  ;;  %v1894_v24 = vmax.f32 %v1642_v1, 0.0 }
 0x1e8   : > { %v1893_v45 = vmax.f32 %v1387_v62, 0.0  ;;  %v1390_v54 = vpop.f32.mrb[122].mxu0  ;;  %v1647_v20 = vpop.f32.mrb[122].mxu1  ;;  %v1895_v3 = vmax.f32 %v1644_v40, 0.0  ;;  %v2371_v40 = vld [vmem:[%s4158_s3] sm:$0xff] }
 0x1e9   : > { %v2044_v0 = vadd.f32 %v4228_v49, %v1892_v15  ;;  %v1391_v9 = vadd.f32 %v1390_v54, %v4229_v34  ;;  %v1392_v6 = vpop.f32.mrb[123].mxu0  ;;  %v1649_v46 = vpop.f32.mrb[123].mxu1  ;;  %2327 = vadd.xlane.f32.xlu1 %v2138_v28  ;;  %v2107_v12 = vadd.f32 %v2075_v59, %v1886_v44  ;;  %v1648_v30 = vadd.f32 %v1647_v20, %v4229_v34 }
 0x1ea   : > { %v1393_v58 = vadd.f32 %v1392_v6, %v4229_v34  ;;  %v1650_v32 = vadd.f32 %v1649_v46, %v4229_v34  ;;  %v2373_v34 = vld [vmem:[%s4158_s3 + $0x10] sm:$0xff] }
 0x1eb   : > { %v2076_v39 = vadd.f32 %v2044_v0, %v1893_v45  ;;  %v1900_v18 = vmax.f32 %v1391_v9, 0.0  ;;  %v2139_v14 = vadd.f32 %v2107_v12, %v1887_v61  ;;  %v1902_v2 = vmax.f32 %v1648_v30, 0.0  ;;  %v2374_v12 = vld [vmem:[%s4158_s3 + $0x18] sm:$0xff]  ;;  %v2375_v30 = vld [vmem:[%s4158_s3 + $0x20] sm:$0xff] }
 0x1ec   : > { %v1901_v23 = vmax.f32 %v1393_v58, 0.0  ;;  %v1396_v51 = vpop.f32.mrb[124].mxu0  ;;  %v1653_v29 = vpop.f32.mrb[124].mxu1  ;;  %v1903_v22 = vmax.f32 %v1650_v32, 0.0 }
 0x1ed   : > { %v2045_v17 = vadd.f32 %v3836_v26, %v1900_v18  ;;  %v1397_v4 = vadd.f32 %v1396_v51, %v4230_v7  ;;  %v1398_v43 = vpop.f32.mrb[125].mxu0  ;;  %v1655_v31 = vpop.f32.mrb[125].mxu1  ;;  %2329 = vadd.xlane.f32.xlu0 %v2139_v14  ;;  %v2108_v37 = vadd.f32 %v2076_v39, %v1894_v24  ;;  %v1654_v50 = vadd.f32 %v1653_v29, %v4230_v7  ;;  %v2376_v29 = vld [vmem:[%s4158_s3 + $0x28] sm:$0xff] }
 0x1ee   : > { %v1399_v25 = vadd.f32 %v1398_v43, %v4230_v7  ;;  %v1656_v38 = vadd.f32 %v1655_v31, %v4230_v7  ;;  %v2377_v43 = vld [vmem:[%s4158_s3 + $0x30] sm:$0xff] }
 0x1ef   : > { %v2077_v8 = vadd.f32 %v2045_v17, %v1901_v23  ;;  %v1908_v13 = vmax.f32 %v1397_v4, 0.0  ;;  %v2140_v57 = vadd.f32 %v2108_v37, %v1895_v3  ;;  %v1910_v11 = vmax.f32 %v1654_v50, 0.0 }
 0x1f0   : > { %v1909_v41 = vmax.f32 %v1399_v25, 0.0  ;;  %v1402_v42 = vpop.f32.mrb[126].mxu0  ;;  %v1659_v21 = vpop.f32.mrb[126].mxu1  ;;  %v1911_v19 = vmax.f32 %v1656_v38, 0.0 }
 0x1f1   : > { %v2046_v26 = vadd.f32 %v3842_v27, %v1908_v13  ;;  %v1403_v5 = vadd.f32 %v1402_v42, %v3831_v52  ;;  %v1404_v35 = vpop.f32.mrb[127].mxu0  ;;  %v1661_v33 = vpop.f32.mrb[127].mxu1  ;;  %2331 = vadd.xlane.f32.xlu1 %v2140_v57  ;;  %v2109_v48 = vadd.f32 %v2077_v8, %v1902_v2  ;;  %v1660_v56 = vadd.f32 %v1659_v21, %v3831_v52  ;;  %v2378_v2 = vld [vmem:[%s4158_s3 + $0x38] sm:$0xff] }
 0x1f2   : > { %v1405_v47 = vadd.f32 %v1404_v35, %v3831_v52  ;;  %v1662_v55 = vadd.f32 %v1661_v33, %v3831_v52 }
 0x1f3   : > { %v2078_v63 = vadd.f32 %v2046_v26, %v1909_v41  ;;  %v1916_v36 = vmax.f32 %v1403_v5, 0.0  ;;  %v2141_v16 = vadd.f32 %v2109_v48, %v1903_v22  ;;  %v1918_v1 = vmax.f32 %v1660_v56, 0.0  ;;  %v2379_v41 = vld [vmem:[%s4158_s3 + $0x40] sm:$0xff]  ;;  %v2380_v5 = vld [vmem:[%s4158_s3 + $0x48] sm:$0xff] }
 0x1f4   : > { %v1917_v60 = vmax.f32 %v1405_v47, 0.0  ;;  %v1919_v59 = vmax.f32 %v1662_v55, 0.0  ;;  %v2381_v47 = vld [vmem:[%s4158_s3 + $0x50] sm:$0xff] }
 0x1f5   : > { %v2047_v27 = vadd.f32 %v3849_v53, %v1916_v36  ;;  %2333 = vadd.xlane.f32.xlu0 %v2141_v16  ;;  %v2110_v10 = vadd.f32 %v2078_v63, %v1910_v11  ;;  %v2372_v53 = vld [vmem:[%s4158_s3 + $0x8] sm:$0xff] }
 0x1f7   : > { %v2079_v62 = vadd.f32 %v2047_v27, %v1917_v60  ;;  %v2142_v44 = vadd.f32 %v2110_v10, %v1911_v19  ;;  %v2382_v60 = vld [vmem:[%s4158_s3 + $0x58] sm:$0xff] }
 0x1f9   : > { %2335 = vadd.xlane.f32.xlu1 %v2142_v44  ;;  %v2111_v15 = vadd.f32 %v2079_v62, %v1918_v1  ;;  %v2383_v1 = vld [vmem:[%s4158_s3 + $0x60] sm:$0xff] }
 0x1fb   : > { %v2143_v28 = vadd.f32 %v2111_v15, %v1919_v59 }
 0x1fd   : > { %2337 = vadd.xlane.f32.xlu0 %v2143_v28  ;;  %v2384_v28 = vld [vmem:[%s4158_s3 + $0x68] sm:$0xff] }
 0x20e   : > { %v2276_v61 = vpop.xlane.xlu0 %2275 }
 0x20f   : > { %v2339_v52 = vmul.f32 0.0009765625, %v2276_v61 }
 0x211   : > { %v2403_v58 = vmul.f32 %v2371_v40, %v2339_v52 }
 0x212   : > { %v2278_v54 = vpop.xlane.xlu1 %2277 }
 0x213   : > { %v2340_v20 = vmul.f32 0.0009765625, %v2278_v54 }
 0x215   : > { %v2404_v6 = vmul.f32 %v2372_v53, %v2340_v20  ;;  %v2385_v53 = vld [vmem:[%s4158_s3 + $0x70] sm:$0xff] }
 0x216   : > { %v2280_v45 = vpop.xlane.xlu0 %2279 }
 0x217   : > { %v2341_v0 = vmul.f32 0.0009765625, %v2280_v45  ;;  %v2435_v23 = vadd.f32 %v2404_v6, %v2403_v58 }
 0x219   : > { %v2405_v39 = vmul.f32 %v2373_v34, %v2341_v0  ;;  %v2386_v34 = vld [vmem:[%s4158_s3 + $0x78] sm:$0xff] }
 0x21a   : > { %v2282_v49 = vpop.xlane.xlu0 %2281 }
 0x21b   : > { %v2342_v46 = vmul.f32 0.0009765625, %v2282_v49  ;;  %v2436_v17 = vadd.f32 %v2435_v23, %v2405_v39 }
 0x21d   : > { %v2406_v32 = vmul.f32 %v2374_v12, %v2342_v46 }
 0x21e   : > { %v2284_v9 = vpop.xlane.xlu1 %2283 }
 0x21f   : > { %v2343_v18 = vmul.f32 0.0009765625, %v2284_v9  ;;  %v2437_v37 = vadd.f32 %v2436_v17, %v2406_v32 }
 0x221   : > { %v2407_v7 = vmul.f32 %v2375_v30, %v2343_v18 }
 0x222   : > { %v2286_v24 = vpop.xlane.xlu0 %2285 }
 0x223   : > { %v2344_v51 = vmul.f32 0.0009765625, %v2286_v24  ;;  %v2438_v13 = vadd.f32 %v2437_v37, %v2407_v7  ;;  %v2387_v24 = vld [vmem:[%s4158_s3 + $0x80] sm:$0xff] }
 0x225   : > { %v2408_v50 = vmul.f32 %v2376_v29, %v2344_v51 }
 0x226   : > { %v2288_v14 = vpop.xlane.xlu1 %2287 }
 0x227   : > { %v2345_v4 = vmul.f32 0.0009765625, %v2288_v14  ;;  %v2439_v21 = vadd.f32 %v2438_v13, %v2408_v50  ;;  %v2388_v14 = vld [vmem:[%s4158_s3 + $0x88] sm:$0xff] }
 0x229   : > { %v2409_v57 = vmul.f32 %v2377_v43, %v2345_v4 }
 0x22a   : > { %v2290_v3 = vpop.xlane.xlu0 %2289 }
 0x22b   : > { %v2346_v25 = vmul.f32 0.0009765625, %v2290_v3  ;;  %v2440_v33 = vadd.f32 %v2439_v21, %v2409_v57  ;;  %v2389_v3 = vld [vmem:[%s4158_s3 + $0x90] sm:$0xff] }
 0x22d   : > { %v2410_v26 = vmul.f32 %v2378_v2, %v2346_v25 }
 0x22e   : > { %v2292_v31 = vpop.xlane.xlu1 %2291 }
 0x22f   : > { %v2347_v22 = vmul.f32 0.0009765625, %v2292_v31  ;;  %v2441_v36 = vadd.f32 %v2440_v33, %v2410_v26  ;;  %v2390_v31 = vld [vmem:[%s4158_s3 + $0x98] sm:$0xff] }
 0x231   : > { %v2411_v48 = vmul.f32 %v2379_v41, %v2347_v22 }
 0x232   : > { %v2294_v8 = vpop.xlane.xlu0 %2293 }
 0x233   : > { %v2348_v38 = vmul.f32 0.0009765625, %v2294_v8  ;;  %v2442_v27 = vadd.f32 %v2441_v36, %v2411_v48  ;;  %v2391_v8 = vld [vmem:[%s4158_s3 + $0xa0] sm:$0xff] }
 0x235   : > { %v2412_v56 = vmul.f32 %v2380_v5, %v2348_v38 }
 0x236   : > { %v2296_v42 = vpop.xlane.xlu1 %2295 }
 0x237   : > { %v2349_v11 = vmul.f32 0.0009765625, %v2296_v42  ;;  %v2443_v44 = vadd.f32 %v2442_v27, %v2412_v56  ;;  %v2392_v42 = vld [vmem:[%s4158_s3 + $0xa8] sm:$0xff] }
 0x239   : > { %v2413_v55 = vmul.f32 %v2381_v47, %v2349_v11 }
 0x23a   : > { %v2298_v35 = vpop.xlane.xlu0 %2297 }
 0x23b   : > { %v2350_v16 = vmul.f32 0.0009765625, %v2298_v35  ;;  %v2444_v45 = vadd.f32 %v2443_v44, %v2413_v55  ;;  %v2393_v35 = vld [vmem:[%s4158_s3 + $0xb0] sm:$0xff] }
 0x23d   : > { %v2414_v59 = vmul.f32 %v2382_v60, %v2350_v16 }
 0x23e   : > { %v2300_v63 = vpop.xlane.xlu1 %2299 }
 0x23f   : > { %v2351_v10 = vmul.f32 0.0009765625, %v2300_v63  ;;  %v2445_v52 = vadd.f32 %v2444_v45, %v2414_v59  ;;  %v2394_v63 = vld [vmem:[%s4158_s3 + $0xb8] sm:$0xff] }
 0x241   : > { %v2415_v54 = vmul.f32 %v2383_v1, %v2351_v10 }
 0x242   : > { %v2302_v19 = vpop.xlane.xlu0 %2301 }
 0x243   : > { %v2352_v15 = vmul.f32 0.0009765625, %v2302_v19  ;;  %v2446_v6 = vadd.f32 %v2445_v52, %v2415_v54  ;;  %v2395_v19 = vld [vmem:[%s4158_s3 + $0xc0] sm:$0xff] }
 0x245   : > { %v2416_v0 = vmul.f32 %v2384_v28, %v2352_v15 }
 0x246   : > { %v2304_v62 = vpop.xlane.xlu1 %2303 }
 0x247   : > { %v2353_v20 = vmul.f32 0.0009765625, %v2304_v62  ;;  %v2447_v39 = vadd.f32 %v2446_v6, %v2416_v0  ;;  %v2396_v62 = vld [vmem:[%s4158_s3 + $0xc8] sm:$0xff] }
 0x249   : > { %v2417_v46 = vmul.f32 %v2385_v53, %v2353_v20 }
 0x24a   : > { %v2306_v61 = vpop.xlane.xlu0 %2305 }
 0x24b   : > { %v2354_v40 = vmul.f32 0.0009765625, %v2306_v61  ;;  %v2448_v32 = vadd.f32 %v2447_v39, %v2417_v46  ;;  %v2397_v61 = vld [vmem:[%s4158_s3 + $0xd0] sm:$0xff] }
 0x24d   : > { %v2418_v18 = vmul.f32 %v2386_v34, %v2354_v40  ;;  %v2399_v34 = vld [vmem:[%s4158_s3 + $0xe0] sm:$0xff] }
 0x24e   : > { %v2308_v49 = vpop.xlane.xlu1 %2307 }
 0x24f   : > { %v2355_v12 = vmul.f32 0.0009765625, %v2308_v49  ;;  %v2449_v7 = vadd.f32 %v2448_v32, %v2418_v18  ;;  %v2398_v49 = vld [vmem:[%s4158_s3 + $0xd8] sm:$0xff]  ;;  %v2401_v18 = vld [vmem:[%s4158_s3 + $0xf0] sm:$0xff] }
 0x251   : > { %v2419_v51 = vmul.f32 %v2387_v24, %v2355_v12  ;;  %v2400_v24 = vld [vmem:[%s4158_s3 + $0xe8] sm:$0xff] }
 0x252   : > { %v2310_v9 = vpop.xlane.xlu0 %2309 }
 0x253   : > { %v2356_v30 = vmul.f32 0.0009765625, %v2310_v9  ;;  %v2450_v50 = vadd.f32 %v2449_v7, %v2419_v51 }
 0x255   : > { %v2420_v4 = vmul.f32 %v2388_v14, %v2356_v30 }
 0x256   : > { %v2312_v58 = vpop.xlane.xlu1 %2311 }
 0x257   : > { %v2357_v29 = vmul.f32 0.0009765625, %v2312_v58  ;;  %v2451_v57 = vadd.f32 %v2450_v50, %v2420_v4 }
 0x259   : > { %v2421_v25 = vmul.f32 %v2389_v3, %v2357_v29  ;;  %v2402_v3 = vld [vmem:[%s4158_s3 + $0xf8] sm:$0xff] }
 0x25a   : > { %v2314_v23 = vpop.xlane.xlu0 %2313 }
 0x25b   : > { %v2358_v43 = vmul.f32 0.0009765625, %v2314_v23  ;;  %v2452_v26 = vadd.f32 %v2451_v57, %v2421_v25  ;;  %v2472_v57 = vld [vmem:[%s4159_s4] sm:$0x1] }
 0x25d   : > { %v2422_v22 = vmul.f32 %v2390_v31, %v2358_v43 }
 0x25e   : > { %v2316_v17 = vpop.xlane.xlu1 %2315 }
 0x25f   : > { %v2359_v2 = vmul.f32 0.0009765625, %v2316_v17  ;;  %v2453_v48 = vadd.f32 %v2452_v26, %v2422_v22 }
 0x261   : > { %v2423_v38 = vmul.f32 %v2391_v8, %v2359_v2 }
 0x262   : > { %v2318_v37 = vpop.xlane.xlu0 %2317 }
 0x263   : > { %v2360_v41 = vmul.f32 0.0009765625, %v2318_v37  ;;  %v2454_v56 = vadd.f32 %v2453_v48, %v2423_v38 }
 0x265   : > { %v2424_v11 = vmul.f32 %v2392_v42, %v2360_v41 }
 0x266   : > { %v2320_v13 = vpop.xlane.xlu1 %2319 }
 0x267   : > { %v2361_v5 = vmul.f32 0.0009765625, %v2320_v13  ;;  %v2455_v55 = vadd.f32 %v2454_v56, %v2424_v11 }
 0x269   : > { %v2425_v16 = vmul.f32 %v2393_v35, %v2361_v5 }
 0x26a   : > { %v2322_v21 = vpop.xlane.xlu0 %2321 }
 0x26b   : > { %v2362_v47 = vmul.f32 0.0009765625, %v2322_v21  ;;  %v2456_v59 = vadd.f32 %v2455_v55, %v2425_v16 }
 0x26d   : > { %v2426_v10 = vmul.f32 %v2394_v63, %v2362_v47 }
 0x26e   : > { %v2324_v33 = vpop.xlane.xlu1 %2323 }
 0x26f   : > { %v2363_v60 = vmul.f32 0.0009765625, %v2324_v33  ;;  %v2457_v54 = vadd.f32 %v2456_v59, %v2426_v10 }
 0x271   : > { %v2427_v15 = vmul.f32 %v2395_v19, %v2363_v60 }
 0x272   : > { %v2326_v36 = vpop.xlane.xlu0 %2325 }
 0x273   : > { %v2364_v1 = vmul.f32 0.0009765625, %v2326_v36  ;;  %v2458_v52 = vadd.f32 %v2457_v54, %v2427_v15 }
 0x275   : > { %v2428_v20 = vmul.f32 %v2396_v62, %v2364_v1 }
 0x276   : > { %v2328_v27 = vpop.xlane.xlu1 %2327 }
 0x277   : > { %v2365_v28 = vmul.f32 0.0009765625, %v2328_v27  ;;  %v2459_v6 = vadd.f32 %v2458_v52, %v2428_v20 }
 0x279   : > { %v2429_v0 = vmul.f32 %v2397_v61, %v2365_v28 }
 0x27a   : > { %v2330_v44 = vpop.xlane.xlu0 %2329 }
 0x27b   : > { %v2366_v53 = vmul.f32 0.0009765625, %v2330_v44  ;;  %v2460_v58 = vadd.f32 %v2459_v6, %v2429_v0 }
 0x27d   : > { %v2430_v46 = vmul.f32 %v2398_v49, %v2366_v53 }
 0x27e   : > { %v2332_v45 = vpop.xlane.xlu1 %2331 }
 0x27f   : > { %v2367_v40 = vmul.f32 0.0009765625, %v2332_v45  ;;  %v2461_v14 = vadd.f32 %v2460_v58, %v2430_v46 }
 0x281   : > { %v2431_v39 = vmul.f32 %v2399_v34, %v2367_v40 }
 0x282   : > { %v2334_v9 = vpop.xlane.xlu0 %2333 }
 0x283   : > { %v2368_v12 = vmul.f32 0.0009765625, %v2334_v9  ;;  %v2462_v51 = vadd.f32 %v2461_v14, %v2431_v39 }
 0x285   : > { %v2432_v23 = vmul.f32 %v2400_v24, %v2368_v12 }
 0x286   : > { %v2336_v30 = vpop.xlane.xlu1 %2335 }
 0x287   : > { %v2369_v32 = vmul.f32 0.0009765625, %v2336_v30  ;;  %v2463_v7 = vadd.f32 %v2462_v51, %v2432_v23 }
 0x289   : > { %v2433_v29 = vmul.f32 %v2401_v18, %v2369_v32 }
 0x28a   : > { %v2338_v17 = vpop.xlane.xlu0 %2337 }
 0x28b   : > { %v2370_v4 = vmul.f32 0.0009765625, %v2338_v17  ;;  %v2464_v43 = vadd.f32 %v2463_v7, %v2433_v29 }
 0x28d   : > { %v2434_v31 = vmul.f32 %v2402_v3, %v2370_v4 }
 0x28f   : > { %v2465_v37 = vadd.f32 %v2464_v43, %v2434_v31 }
 0x291   : > { %v2466_v50 = vrot.slane %v2465_v37, 4 }
 0x293   : > { %v2467_v25 = vadd.f32 %v2466_v50, %v2465_v37 }
 0x295   : > { %v2468_v2 = vrot.slane %v2467_v25, 2 }
 0x297   : > { %v2469_v8 = vadd.f32 %v2468_v2, %v2467_v25 }
 0x299   : > { %v2470_v13 = vrot.slane %v2469_v8, 1 }
 0x29b   : > { %v2471_v22 = vadd.f32 %v2470_v13, %v2469_v8 }
 0x29d   : > { %v2473_v41 = vadd.f32 %v2472_v57, %v2471_v22 }
 0x29f   : > { %2474 = vst [vmem:[%s239_s13] sm:$0x1] %v2473_v41 }
 0x2a0   : > { %2780 = shalt.err (!%p2777_p5)
}
 0x2a1   : > { %s2781_s7 = scalar_lea.hbm %s4108_s17, 16  ;;  %s2785_s10 = scalar_lea.hbm %s4160_s5, 32 }
 0x2a2   : > { %p2782_p6 = scmp.ne.s32.totalorder %s4108_s17, %s2781_s7  ;;  %p2786_p10 = scmp.lt.u32.totalorder %s4108_s17, %s4160_s5 }
 0x2a3   : > { %p2787_p11 = scmp.lt.u32.totalorder %s2785_s10, %s2781_s7  ;;  %p2789_p13 = scmp.lt.u32.totalorder %s2781_s7, %s4108_s17 }
 0x2a4   : > { %p2783_p7 = pnand %p2782_p6, %p2920_p4 }
 0x2a5   : > { %p2788_p12 = por %p2787_p11, %p2786_p10 }
 0x2a6   : > { %p2784_p9 = pneg %p2783_p7 }
 0x2a7   : > { %p2790_p0 = por %p2789_p13, %p2788_p12 }
 0x2a9   : > { %p2791_p1 = pnand %p2790_p0, %p2784_p9 }
 0x2ab   : > { %2794 = shalt.err (!%p2791_p1)
}
 0x2ac   : > { %2704 = dma.vmem_to_hbm [thread:$0]  (%p2920_p4), %s4110_s14, 16, %s4108_s17, %s2476_s24  }
 0x2ad PF: > { %p2710_p2 = scmp.ge.s32.totalorder %s2845_s23, 2  ;;  %s2500_s13 = sand.u32 1, %s2825_s18  }
 0x2ae   : > { %s2501_s15 = scalar_lea.sflag [#allocation4], %s2500_s13 }
 0x2af   : > { %p2707_p3 = pnand %p2710_p2, %p2927_p8 }
 0x2b1   : > { %2820 = dma.done.wait (!%p2707_p3), %s2501_s15, 16  }
 0x2b2   : > { %2822 = vsyncadd (!%p2707_p3), %s2501_s15, 4294967280  ;;  %s18_s23 = sadd.s32 1, %s2845_s23   ;;  %s4231_s18 = smov %s2829_s19 }
 0x2b3   : > { %p15_p5 = scmp.ge.s32.totalorder %s18_s23, 4   ;;  %s4232_s19 = smov %s2833_s20 }
 0x2b4   : > { %s4233_s20 = smov %s2933_s6  ;;  %s4234_s21 = smov %s2841_s22 }
 0x2b5   : > { %s4235_s22 = smov %s4237_s26  ;;  %17 = sbr.rel (!%p15_p5) target bundleno = 4 (0x4), region = 83 }
 0x2bc   :  { %2505 = vsyncpa [#allocation4], 1 }
 0x2bd   :  { %2507 = vsyncpa [#allocation4 + $0x1], 1 }

</bundles_post_ra>
